<compile_context>
chip_gen: v5e
topology: v5e:2x2
jax: 0.10.0
libtpu: 0.0.40
codegen_flags: <defaults>
</compile_context>

<pallas_src>
import jax
import jax.numpy as jnp
import numpy as np
from jax.experimental import pallas as pl
from jax.experimental.pallas import tpu as pltpu

D_MODEL = 4
D_STATE = 8                     # chosen so d_inner == d_state (module's einsum requires it)
D_CONV = 4
EXPAND = 2
D_INNER = EXPAND * D_MODEL      # 8
SEQ_LEN = 100                   # must be 100: self.C has a hard-coded leading dim of 100
BATCH = 2

_DS = D_INNER * D_STATE         # 64, flattened state feature width
_SLAB = 128                     # packed output width: [new_state(64) | out(4) | zeros]
_P_ROWS = 56                    # packed parameter block rows

# Packed parameter block layout, rows of a (56, 128) f32 block:
#   rows  0:8  cols 0:64   B_ssm-expand weight (x_proj B half, expanded)     (8, 64)
#   rows  8:16 cols 0:64   dt-expand weight (dt_proj, expanded)              (8, 64)
#   rows 16:24 cols 64:68  out_proj weight.T routed into slab lanes 64:68    (8, 128)
#   row  24    cols 0:64   dt_proj bias, expanded                            (64,)
#   row  25    cols 0:64   A_log flattened                                   (64,)
#   row  26    cols 0:8    in_proj bias (x half)                             (8,)
#   row  27    cols 0:8    in_proj bias (z half)                             (8,)
#   row  28    cols 0:8    conv bias                                         (8,)
#   row  29    cols 0:8    D1                                                (8,)
#   row  30    cols 64:68  slab bias (out_proj bias routed)                  (128,)
#   rows 32:36 cols 0:8    in_proj weight.T, x half                          (4, 8)
#   rows 40:44 cols 0:8    in_proj weight.T, z half                          (4, 8)
#   rows 48:52 cols 0:8    depthwise conv taps, [tap k, channel]             (4, 8)


def _silu(x):
    # x * sigmoid(x), with sigmoid(x) = 0.5*(1 + tanh(x/2)): single EUP push.
    return x * (0.5 * (1.0 + jnp.tanh(0.5 * x)))


def _softplus(x):
    # numerically stable log(1 + exp(x)); plain exp/log lower on the EUP.
    return jnp.maximum(x, 0.0) + jnp.log(1.0 + jnp.exp(-jnp.abs(x)))


def simp_mamba_kernel(h_ref, s_ref, c_ref, p_ref, slab_ref):
    f32 = jnp.float32
    L = h_ref.shape[0]                                  # one sequence per grid step

    # ---- packed parameters (window loads, aligned starts) ----
    w_bexp = p_ref[0:8, 0:_DS]                          # (8, 64)
    w_dtexp = p_ref[8:16, 0:_DS]                        # (8, 64)
    w_out_r = p_ref[16:24, :]                           # (8, 128)  out_proj -> lanes 64:68
    b_dt_e = p_ref[24:25, 0:_DS]                        # (1, 64)
    a_log = p_ref[25:26, 0:_DS]                         # (1, 64)
    b_in_x = p_ref[26:27, 0:D_INNER]                    # (1, 8)
    b_in_z = p_ref[27:28, 0:D_INNER]                    # (1, 8)
    conv_b = p_ref[28:29, 0:D_INNER]                    # (1, 8)
    d1 = p_ref[29:30, 0:D_INNER]                        # (1, 8)
    slab_b = p_ref[30:31, :]                            # (1, 128)  b_out at lanes 64:68
    w_in_x = p_ref[32:36, 0:D_INNER]                    # (4, 8)
    w_in_z = p_ref[40:44, 0:D_INNER]                    # (4, 8)

    # ---- in_proj: x, z (two tiny matmuls; no lane-offset value slicing) ----
    h = h_ref[...]                                      # (L, 4)
    x = jnp.dot(h, w_in_x, preferred_element_type=f32) + b_in_x      # (L, 8)
    z = jnp.dot(h, w_in_z, preferred_element_type=f32) + b_in_z      # (L, 8)

    # ---- causal depthwise conv1d over the sequence axis ----
    # tap with shift s reads x[l - s]; built as a (L, L) shift-matrix matmul on
    # the idle MXU (boundary rows l < s select nothing -> zero automatically).
    ri = jax.lax.broadcasted_iota(jnp.int32, (L, L), 0)
    ci = jax.lax.broadcasted_iota(jnp.int32, (L, L), 1)
    diff = ri - ci
    conv_acc = x * p_ref[48 + D_CONV - 1:48 + D_CONV, 0:D_INNER]     # shift 0, tap K-1
    for s in range(1, D_CONV):                          # static unroll, D_CONV == 4
        k = D_CONV - 1 - s
        shift = jnp.where(diff == s, 1.0, 0.0)          # (L, L) shift matrix
        tap = jnp.dot(shift, x, preferred_element_type=f32)          # (L, 8) = x[l-s]
        conv_acc = conv_acc + tap * p_ref[48 + k:49 + k, 0:D_INNER]
    x_act = _silu(conv_acc + conv_b)                    # (L, 8), SiLU(conv(x))

    # ---- x_proj (B_ssm half) and dt_proj, pre-expanded to flat width 64 ----
    bs_exp = jnp.dot(x_act, w_bexp, preferred_element_type=f32)      # (L, 64)
    dt_exp = _softplus(jnp.dot(x_act, w_dtexp, preferred_element_type=f32) + b_dt_e)

    # ---- SSM state update, lane-flattened (L, 64) ----
    a_flat = -jnp.exp(a_log)                            # (1, 64) == A[d, n] flattened
    dA = jnp.exp(dt_exp * a_flat)
    actual = s_ref[...] * dA + dt_exp * bs_exp          # (L, 64) new state

    # ---- y = einsum('bldn,ldn->bln', actual, C): elementwise C, then a (64, 8)
    #      one-hot selector matmul summing over d_inner on the MXU ----
    fi = jax.lax.broadcasted_iota(jnp.int32, (_DS, D_STATE), 0)
    ni = jax.lax.broadcasted_iota(jnp.int32, (_DS, D_STATE), 1)
    sel = jnp.where(jnp.bitwise_and(fi, D_STATE - 1) == ni, 1.0, 0.0)    # (64, 8)
    y = jnp.dot(actual * c_ref[...], sel, preferred_element_type=f32)    # (L, 8)
    y = (y + d1 * x_act) * _silu(z)

    # ---- packed lane-dense output: [new_state | out | zeros], ONE 128-wide store.
    #      The state half is routed through an identity matmul so the slab comes
    #      straight off the MXU with no lane concat / masked stores. ----
    ei = jax.lax.broadcasted_iota(jnp.int32, (_DS, _SLAB), 0)
    ej = jax.lax.broadcasted_iota(jnp.int32, (_DS, _SLAB), 1)
    eye = jnp.where(ei == ej, 1.0, 0.0)                 # (64, 128) identity into lanes 0:64
    slab_ref[...] = (jnp.dot(actual, eye, preferred_element_type=f32)
                     + jnp.dot(y, w_out_r, preferred_element_type=f32)
                     + slab_b)


def simp_mamba_forward(hidden, state, params):
    B, L, d_model = hidden.shape
    _, _, d_inner, d_state = state.shape
    assert (L, d_model, d_inner, d_state) == (SEQ_LEN, D_MODEL, D_INNER, D_STATE), \
        "SimpMamba forward requires seq_len == 100 and d_inner == d_state"

    s_flat = state.reshape(B, L, d_inner * d_state)                 # (B, L, 64)
    c_flat = params['C'].reshape(L, d_state * d_state)              # (L, 64), no tiling
    pblock = params['packed']                                       # (56, 128)

    slab = pl.pallas_call(
        simp_mamba_kernel,
        out_shape=jax.ShapeDtypeStruct((B, L, _SLAB), jnp.float32),
        grid_spec=pltpu.PrefetchScalarGridSpec(
            num_scalar_prefetch=0,
            grid=(B,),                                  # one sequence per step, megacore-parallel
            in_specs=[
                pl.BlockSpec((None, L, d_model), lambda i: (i, 0, 0)),
                pl.BlockSpec((None, L, d_inner * d_state), lambda i: (i, 0, 0)),
                pl.BlockSpec((L, d_state * d_state), lambda i: (0, 0)),
                pl.BlockSpec(pblock.shape, lambda i: (0, 0)),
            ],
            out_specs=pl.BlockSpec((None, L, _SLAB), lambda i: (i, 0, 0)),
        ),
        compiler_params=pltpu.CompilerParams(dimension_semantics=("parallel",)),
    )(hidden, s_flat, c_flat, pblock)

    new_state = slab[:, :, :_DS].reshape(B, L, d_inner, d_state)
    out = slab[:, :, _DS:_DS + d_model]
    return out, new_state


def init_params(key):
    # Deterministic synthetic parameters in PyTorch layouts (SimpMamba.__init__).
    # Submodules unused by forward (lstm, error_proj, pred_proj, D, L) are omitted.
    ks = jax.random.split(key, 9)
    u = lambda k, shape, s: jax.random.uniform(k, shape, jnp.float32, -s, s)
    w_in = u(ks[0], (2 * D_INNER, D_MODEL), 1.0 / np.sqrt(D_MODEL))
    b_in = u(ks[1], (2 * D_INNER,), 1.0 / np.sqrt(D_MODEL))
    conv_w = u(ks[2], (D_INNER, 1, D_CONV), 1.0 / np.sqrt(D_CONV))  # torch conv1d layout
    conv_b = u(ks[3], (D_INNER,), 1.0 / np.sqrt(D_CONV))
    w_x = u(ks[4], (2 * D_STATE, D_INNER), 1.0 / np.sqrt(D_INNER))
    w_dt = u(ks[5], (D_INNER, D_INNER), D_INNER ** (-0.5))          # dt_init_std
    b_dt = u(ks[6], (D_INNER,), 1.0 / np.sqrt(D_INNER))
    A = jnp.tile(jnp.arange(1, D_STATE + 1, dtype=jnp.float32)[None, :], (D_INNER, 1))
    w_out = u(ks[7], (D_MODEL, D_INNER), 1.0 / np.sqrt(D_INNER))
    b_out = u(ks[8], (D_MODEL,), 1.0 / np.sqrt(D_INNER))
    return dict(w_in=w_in, b_in=b_in, conv_w=conv_w, conv_b=conv_b, w_x=w_x,
                w_dt=w_dt, b_dt=b_dt, A_log=jnp.log(A),
                D1=jnp.ones((D_INNER,), jnp.float32),
                C=jnp.ones((SEQ_LEN, D_STATE, D_STATE), jnp.float32),
                w_out=w_out, b_out=b_out)


def pack_params(p):
    # Pre-expand x_proj's used (B_ssm) half and dt_proj to the flattened
    # (d_inner*d_state) layout, route out_proj into slab lanes 64:68, and pack
    # every small weight/bias into a single (56, 128) block (one DMA).
    P = np.zeros((_P_ROWS, 128), np.float32)
    w_x = np.asarray(p['w_x'], np.float32)
    w_dt = np.asarray(p['w_dt'], np.float32)
    w_in = np.asarray(p['w_in'], np.float32)
    b_in = np.asarray(p['b_in'], np.float32)
    conv_w = np.asarray(p['conv_w'], np.float32)
    w_out = np.asarray(p['w_out'], np.float32)

    P[0:8, 0:_DS] = np.tile(w_x[:D_STATE, :].T, (1, D_INNER))          # B_ssm expand
    P[8:16, 0:_DS] = np.repeat(w_dt.T, D_STATE, axis=1)                # dt expand
    P[16:24, _DS:_DS + D_MODEL] = w_out.T                              # out_proj routed
    P[24, 0:_DS] = np.repeat(np.asarray(p['b_dt'], np.float32), D_STATE)
    P[25, 0:_DS] = np.asarray(p['A_log'], np.float32).reshape(-1)
    P[26, 0:D_INNER] = b_in[:D_INNER]
    P[27, 0:D_INNER] = b_in[D_INNER:]
    P[28, 0:D_INNER] = np.asarray(p['conv_b'], np.float32)
    P[29, 0:D_INNER] = np.asarray(p['D1'], np.float32)
    P[30, _DS:_DS + D_MODEL] = np.asarray(p['b_out'], np.float32)
    P[32:36, 0:D_INNER] = w_in[:D_INNER, :].T
    P[40:44, 0:D_INNER] = w_in[D_INNER:, :].T
    P[48:48 + D_CONV, 0:D_INNER] = conv_w[:, 0, :].T                   # [tap k, channel]
    return dict(packed=jnp.asarray(P), C=jnp.asarray(p['C'], jnp.float32))


def ref_forward(hidden, state, p):
    # Pure-JAX reference mirroring the PyTorch forward (torch-layout params).
    B, L, _ = hidden.shape
    xz = hidden @ p['w_in'].T + p['b_in']
    x, z = xz[..., :D_INNER], xz[..., D_INNER:]
    cw = p['conv_w'][:, 0, :]                                # (d_inner, K)
    x_pad = jnp.pad(x, ((0, 0), (D_CONV - 1, 0), (0, 0)))
    acc = jnp.zeros_like(x)
    for k in range(D_CONV):
        acc = acc + x_pad[:, k:k + L, :] * cw[:, k][None, None, :]
    xc = acc + p['conv_b'][None, None, :]
    x_act = jax.nn.silu(xc)
    Bs = (x_act @ p['w_x'].T)[..., :D_STATE]
    dt = jax.nn.softplus(x_act @ p['w_dt'].T + p['b_dt'])
    A = -jnp.exp(p['A_log'])
    dA = jnp.exp(dt[..., None] * A)
    dB = dt[..., None] * Bs[..., None, :]
    actual = state * dA + dB
    y = jnp.einsum('bldn,ldn->bln', actual, p['C']) + p['D1'] * x_act
    y = y * jax.nn.silu(z)
    out = y @ p['w_out'].T + p['b_out']
    return out, actual


if __name__ == "__main__":
    key = jax.random.PRNGKey(0)
    kp, kh, ks = jax.random.split(key, 3)
    raw = init_params(kp)
    params = pack_params(raw)

    hidden = jax.random.normal(kh, (BATCH, SEQ_LEN, D_MODEL), jnp.float32)
    state = 0.1 * jax.random.normal(ks, (BATCH, SEQ_LEN, D_INNER, D_STATE), jnp.float32)

    out, new_state = simp_mamba_forward(hidden, state, params)
    out, new_state = jax.block_until_ready((out, new_state))

    ref_out, ref_state = ref_forward(hidden, state, raw)
    assert out.shape == (BATCH, SEQ_LEN, D_MODEL)
    assert new_state.shape == (BATCH, SEQ_LEN, D_INNER, D_STATE)
    np.testing.assert_allclose(np.asarray(out), np.asarray(ref_out), rtol=1e-2, atol=3e-3)
    np.testing.assert_allclose(np.asarray(new_state), np.asarray(ref_state), rtol=1e-2, atol=3e-3)

    print("KERNEL_OK")
</pallas_src>

<mosaic_0001>
module attributes {stable_mosaic.version = 11 : i64} {
  func.func @simp_mamba_kernel(%arg0: i32, %arg1: memref<1x100x4xf32, #tpu.memory_space<vmem>>, %arg2: memref<1x100x64xf32, #tpu.memory_space<vmem>>, %arg3: memref<100x64xf32, #tpu.memory_space<vmem>>, %arg4: memref<56x128xf32, #tpu.memory_space<vmem>>, %arg5: memref<1x100x128xf32, #tpu.memory_space<vmem>>) attributes {dimension_semantics = [#tpu.dimension_semantics<parallel>], iteration_bounds = array<i64: 2>, scalar_prefetch = 0 : i64, scratch_operands = 0 : i64, tpu.core_type = #tpu.core_type<tc>, window_params = [{transform_indices = @transform_0, window_bounds = array<i64: 1, 100, 4>}, {transform_indices = @transform_1, window_bounds = array<i64: 1, 100, 64>}, {pipeline_mode = #tpu.pipeline_mode<synchronous>, transform_indices = @transform_2, window_bounds = array<i64: 100, 64>}, {pipeline_mode = #tpu.pipeline_mode<synchronous>, transform_indices = @transform_3, window_bounds = array<i64: 56, 128>}, {transform_indices = @transform_4, window_bounds = array<i64: 1, 100, 128>}]} {
    %c0 = arith.constant 0 : index
    %c0_0 = arith.constant 0 : index
    %0 = vector.load %arg4[%c0, %c0_0] : memref<56x128xf32, #tpu.memory_space<vmem>>, vector<8x64xf32>
    %c8 = arith.constant 8 : index
    %c0_1 = arith.constant 0 : index
    %1 = vector.load %arg4[%c8, %c0_1] : memref<56x128xf32, #tpu.memory_space<vmem>>, vector<8x64xf32>
    %c16 = arith.constant 16 : index
    %c0_2 = arith.constant 0 : index
    %2 = vector.load %arg4[%c16, %c0_2] : memref<56x128xf32, #tpu.memory_space<vmem>>, vector<8x128xf32>
    %c24 = arith.constant 24 : index
    %c0_3 = arith.constant 0 : index
    %3 = vector.load %arg4[%c24, %c0_3] : memref<56x128xf32, #tpu.memory_space<vmem>>, vector<1x64xf32>
    %c25 = arith.constant 25 : index
    %c0_4 = arith.constant 0 : index
    %4 = vector.load %arg4[%c25, %c0_4] : memref<56x128xf32, #tpu.memory_space<vmem>>, vector<1x64xf32>
    %c26 = arith.constant 26 : index
    %c0_5 = arith.constant 0 : index
    %5 = vector.load %arg4[%c26, %c0_5] : memref<56x128xf32, #tpu.memory_space<vmem>>, vector<1x8xf32>
    %c27 = arith.constant 27 : index
    %c0_6 = arith.constant 0 : index
    %6 = vector.load %arg4[%c27, %c0_6] : memref<56x128xf32, #tpu.memory_space<vmem>>, vector<1x8xf32>
    %c28 = arith.constant 28 : index
    %c0_7 = arith.constant 0 : index
    %7 = vector.load %arg4[%c28, %c0_7] : memref<56x128xf32, #tpu.memory_space<vmem>>, vector<1x8xf32>
    %c29 = arith.constant 29 : index
    %c0_8 = arith.constant 0 : index
    %8 = vector.load %arg4[%c29, %c0_8] : memref<56x128xf32, #tpu.memory_space<vmem>>, vector<1x8xf32>
    %c30 = arith.constant 30 : index
    %c0_9 = arith.constant 0 : index
    %9 = vector.load %arg4[%c30, %c0_9] : memref<56x128xf32, #tpu.memory_space<vmem>>, vector<1x128xf32>
    %c32 = arith.constant 32 : index
    %c0_10 = arith.constant 0 : index
    %10 = vector.load %arg4[%c32, %c0_10] : memref<56x128xf32, #tpu.memory_space<vmem>>, vector<4x8xf32>
    %c40 = arith.constant 40 : index
    %c0_11 = arith.constant 0 : index
    %11 = vector.load %arg4[%c40, %c0_11] : memref<56x128xf32, #tpu.memory_space<vmem>>, vector<4x8xf32>
    %c0_12 = arith.constant 0 : index
    %c0_13 = arith.constant 0 : index
    %c0_14 = arith.constant 0 : index
    %12 = vector.load %arg1[%c0_12, %c0_13, %c0_14] : memref<1x100x4xf32, #tpu.memory_space<vmem>>, vector<1x100x4xf32>
    %13 = vector.shape_cast %12 : vector<1x100x4xf32> to vector<100x4xf32>
    %cst = arith.constant dense<0.000000e+00> : vector<100x8xf32>
    %14 = tpu.matmul %13, %10, %cst {dimension_numbers = #tpu.dot_dimension_numbers<[1], [0], [0], [1], [0, 0, 1, 1], [], []>} : vector<100x4xf32>, vector<4x8xf32>, vector<100x8xf32> -> vector<100x8xf32>
    %15 = vector.broadcast %5 : vector<1x8xf32> to vector<100x8xf32>
    %16 = arith.addf %14, %15 : vector<100x8xf32>
    %cst_15 = arith.constant dense<0.000000e+00> : vector<100x8xf32>
    %17 = tpu.matmul %13, %11, %cst_15 {dimension_numbers = #tpu.dot_dimension_numbers<[1], [0], [0], [1], [0, 0, 1, 1], [], []>} : vector<100x4xf32>, vector<4x8xf32>, vector<100x8xf32> -> vector<100x8xf32>
    %18 = vector.broadcast %6 : vector<1x8xf32> to vector<100x8xf32>
    %19 = arith.addf %17, %18 : vector<100x8xf32>
    %20 = tpu.iota {dimensions = array<i32: 0>} : vector<100x100xi32>
    %21 = tpu.iota {dimensions = array<i32: 1>} : vector<100x100xi32>
    %22 = arith.subi %20, %21 : vector<100x100xi32>
    %c51 = arith.constant 51 : index
    %c0_16 = arith.constant 0 : index
    %23 = vector.load %arg4[%c51, %c0_16] : memref<56x128xf32, #tpu.memory_space<vmem>>, vector<1x8xf32>
    %24 = vector.broadcast %23 : vector<1x8xf32> to vector<100x8xf32>
    %25 = arith.mulf %16, %24 : vector<100x8xf32>
    %c1_i32 = arith.constant 1 : i32
    %26 = vector.broadcast %c1_i32 : i32 to vector<100x100xi32>
    %27 = arith.cmpi eq, %22, %26 : vector<100x100xi32>
    %cst_17 = arith.constant 1.000000e+00 : f32
    %cst_18 = arith.constant 0.000000e+00 : f32
    %28 = vector.broadcast %cst_17 : f32 to vector<100x100xf32>
    %29 = vector.broadcast %cst_18 : f32 to vector<100x100xf32>
    %30 = arith.select %27, %28, %29 : vector<100x100xi1>, vector<100x100xf32>
    %cst_19 = arith.constant dense<0.000000e+00> : vector<100x8xf32>
    %31 = tpu.matmul %30, %16, %cst_19 {dimension_numbers = #tpu.dot_dimension_numbers<[1], [0], [0], [1], [0, 0, 1, 1], [], []>} : vector<100x100xf32>, vector<100x8xf32>, vector<100x8xf32> -> vector<100x8xf32>
    %c50 = arith.constant 50 : index
    %c0_20 = arith.constant 0 : index
    %32 = vector.load %arg4[%c50, %c0_20] : memref<56x128xf32, #tpu.memory_space<vmem>>, vector<1x8xf32>
    %33 = vector.broadcast %32 : vector<1x8xf32> to vector<100x8xf32>
    %34 = arith.mulf %31, %33 : vector<100x8xf32>
    %35 = arith.addf %25, %34 : vector<100x8xf32>
    %c2_i32 = arith.constant 2 : i32
    %36 = vector.broadcast %c2_i32 : i32 to vector<100x100xi32>
    %37 = arith.cmpi eq, %22, %36 : vector<100x100xi32>
    %cst_21 = arith.constant 1.000000e+00 : f32
    %cst_22 = arith.constant 0.000000e+00 : f32
    %38 = vector.broadcast %cst_21 : f32 to vector<100x100xf32>
    %39 = vector.broadcast %cst_22 : f32 to vector<100x100xf32>
    %40 = arith.select %37, %38, %39 : vector<100x100xi1>, vector<100x100xf32>
    %cst_23 = arith.constant dense<0.000000e+00> : vector<100x8xf32>
    %41 = tpu.matmul %40, %16, %cst_23 {dimension_numbers = #tpu.dot_dimension_numbers<[1], [0], [0], [1], [0, 0, 1, 1], [], []>} : vector<100x100xf32>, vector<100x8xf32>, vector<100x8xf32> -> vector<100x8xf32>
    %c49 = arith.constant 49 : index
    %c0_24 = arith.constant 0 : index
    %42 = vector.load %arg4[%c49, %c0_24] : memref<56x128xf32, #tpu.memory_space<vmem>>, vector<1x8xf32>
    %43 = vector.broadcast %42 : vector<1x8xf32> to vector<100x8xf32>
    %44 = arith.mulf %41, %43 : vector<100x8xf32>
    %45 = arith.addf %35, %44 : vector<100x8xf32>
    %c3_i32 = arith.constant 3 : i32
    %46 = vector.broadcast %c3_i32 : i32 to vector<100x100xi32>
    %47 = arith.cmpi eq, %22, %46 : vector<100x100xi32>
    %cst_25 = arith.constant 1.000000e+00 : f32
    %cst_26 = arith.constant 0.000000e+00 : f32
    %48 = vector.broadcast %cst_25 : f32 to vector<100x100xf32>
    %49 = vector.broadcast %cst_26 : f32 to vector<100x100xf32>
    %50 = arith.select %47, %48, %49 : vector<100x100xi1>, vector<100x100xf32>
    %cst_27 = arith.constant dense<0.000000e+00> : vector<100x8xf32>
    %51 = tpu.matmul %50, %16, %cst_27 {dimension_numbers = #tpu.dot_dimension_numbers<[1], [0], [0], [1], [0, 0, 1, 1], [], []>} : vector<100x100xf32>, vector<100x8xf32>, vector<100x8xf32> -> vector<100x8xf32>
    %c48 = arith.constant 48 : index
    %c0_28 = arith.constant 0 : index
    %52 = vector.load %arg4[%c48, %c0_28] : memref<56x128xf32, #tpu.memory_space<vmem>>, vector<1x8xf32>
    %53 = vector.broadcast %52 : vector<1x8xf32> to vector<100x8xf32>
    %54 = arith.mulf %51, %53 : vector<100x8xf32>
    %55 = arith.addf %45, %54 : vector<100x8xf32>
    %56 = vector.broadcast %7 : vector<1x8xf32> to vector<100x8xf32>
    %57 = arith.addf %55, %56 : vector<100x8xf32>
    %cst_29 = arith.constant 5.000000e-01 : f32
    %58 = vector.broadcast %cst_29 : f32 to vector<100x8xf32>
    %59 = arith.mulf %58, %57 : vector<100x8xf32>
    %60 = math.tanh %59 : vector<100x8xf32>
    %cst_30 = arith.constant 1.000000e+00 : f32
    %61 = vector.broadcast %cst_30 : f32 to vector<100x8xf32>
    %62 = arith.addf %61, %60 : vector<100x8xf32>
    %cst_31 = arith.constant 5.000000e-01 : f32
    %63 = vector.broadcast %cst_31 : f32 to vector<100x8xf32>
    %64 = arith.mulf %63, %62 : vector<100x8xf32>
    %65 = arith.mulf %57, %64 : vector<100x8xf32>
    %cst_32 = arith.constant dense<0.000000e+00> : vector<100x64xf32>
    %66 = tpu.matmul %65, %0, %cst_32 {dimension_numbers = #tpu.dot_dimension_numbers<[1], [0], [0], [1], [0, 0, 1, 1], [], []>} : vector<100x8xf32>, vector<8x64xf32>, vector<100x64xf32> -> vector<100x64xf32>
    %cst_33 = arith.constant dense<0.000000e+00> : vector<100x64xf32>
    %67 = tpu.matmul %65, %1, %cst_33 {dimension_numbers = #tpu.dot_dimension_numbers<[1], [0], [0], [1], [0, 0, 1, 1], [], []>} : vector<100x8xf32>, vector<8x64xf32>, vector<100x64xf32> -> vector<100x64xf32>
    %68 = vector.broadcast %3 : vector<1x64xf32> to vector<100x64xf32>
    %69 = arith.addf %67, %68 : vector<100x64xf32>
    %cst_34 = arith.constant 0.000000e+00 : f32
    %70 = vector.broadcast %cst_34 : f32 to vector<100x64xf32>
    %71 = arith.maximumf %69, %70 : vector<100x64xf32>
    %72 = math.absf %69 : vector<100x64xf32>
    %cst_35 = arith.constant 0.000000e+00 : f32
    %73 = vector.broadcast %cst_35 : f32 to vector<100x64xf32>
    %74 = arith.subf %73, %72 : vector<100x64xf32>
    %75 = math.exp %74 : vector<100x64xf32>
    %cst_36 = arith.constant 1.000000e+00 : f32
    %76 = vector.broadcast %cst_36 : f32 to vector<100x64xf32>
    %77 = arith.addf %76, %75 : vector<100x64xf32>
    %78 = math.log %77 : vector<100x64xf32>
    %79 = arith.addf %71, %78 : vector<100x64xf32>
    %80 = math.exp %4 : vector<1x64xf32>
    %cst_37 = arith.constant 0.000000e+00 : f32
    %81 = vector.broadcast %cst_37 : f32 to vector<1x64xf32>
    %82 = arith.subf %81, %80 : vector<1x64xf32>
    %83 = vector.broadcast %82 : vector<1x64xf32> to vector<100x64xf32>
    %84 = arith.mulf %79, %83 : vector<100x64xf32>
    %85 = math.exp %84 : vector<100x64xf32>
    %c0_38 = arith.constant 0 : index
    %c0_39 = arith.constant 0 : index
    %c0_40 = arith.constant 0 : index
    %86 = vector.load %arg2[%c0_38, %c0_39, %c0_40] : memref<1x100x64xf32, #tpu.memory_space<vmem>>, vector<1x100x64xf32>
    %87 = vector.shape_cast %86 : vector<1x100x64xf32> to vector<100x64xf32>
    %88 = arith.mulf %87, %85 : vector<100x64xf32>
    %89 = arith.mulf %79, %66 : vector<100x64xf32>
    %90 = arith.addf %88, %89 : vector<100x64xf32>
    %91 = tpu.iota {dimensions = array<i32: 0>} : vector<64x8xi32>
    %92 = tpu.iota {dimensions = array<i32: 1>} : vector<64x8xi32>
    %c7_i32 = arith.constant 7 : i32
    %93 = vector.broadcast %c7_i32 : i32 to vector<64x8xi32>
    %94 = arith.andi %91, %93 : vector<64x8xi32>
    %95 = arith.cmpi eq, %94, %92 : vector<64x8xi32>
    %cst_41 = arith.constant 1.000000e+00 : f32
    %cst_42 = arith.constant 0.000000e+00 : f32
    %96 = vector.broadcast %cst_41 : f32 to vector<64x8xf32>
    %97 = vector.broadcast %cst_42 : f32 to vector<64x8xf32>
    %98 = arith.select %95, %96, %97 : vector<64x8xi1>, vector<64x8xf32>
    %c0_43 = arith.constant 0 : index
    %c0_44 = arith.constant 0 : index
    %99 = vector.load %arg3[%c0_43, %c0_44] : memref<100x64xf32, #tpu.memory_space<vmem>>, vector<100x64xf32>
    %100 = arith.mulf %90, %99 : vector<100x64xf32>
    %cst_45 = arith.constant dense<0.000000e+00> : vector<100x8xf32>
    %101 = tpu.matmul %100, %98, %cst_45 {dimension_numbers = #tpu.dot_dimension_numbers<[1], [0], [0], [1], [0, 0, 1, 1], [], []>} : vector<100x64xf32>, vector<64x8xf32>, vector<100x8xf32> -> vector<100x8xf32>
    %102 = vector.broadcast %8 : vector<1x8xf32> to vector<100x8xf32>
    %103 = arith.mulf %102, %65 : vector<100x8xf32>
    %104 = arith.addf %101, %103 : vector<100x8xf32>
    %cst_46 = arith.constant 5.000000e-01 : f32
    %105 = vector.broadcast %cst_46 : f32 to vector<100x8xf32>
    %106 = arith.mulf %105, %19 : vector<100x8xf32>
    %107 = math.tanh %106 : vector<100x8xf32>
    %cst_47 = arith.constant 1.000000e+00 : f32
    %108 = vector.broadcast %cst_47 : f32 to vector<100x8xf32>
    %109 = arith.addf %108, %107 : vector<100x8xf32>
    %cst_48 = arith.constant 5.000000e-01 : f32
    %110 = vector.broadcast %cst_48 : f32 to vector<100x8xf32>
    %111 = arith.mulf %110, %109 : vector<100x8xf32>
    %112 = arith.mulf %19, %111 : vector<100x8xf32>
    %113 = arith.mulf %104, %112 : vector<100x8xf32>
    %114 = tpu.iota {dimensions = array<i32: 0>} : vector<64x128xi32>
    %115 = tpu.iota {dimensions = array<i32: 1>} : vector<64x128xi32>
    %116 = arith.cmpi eq, %114, %115 : vector<64x128xi32>
    %cst_49 = arith.constant 1.000000e+00 : f32
    %cst_50 = arith.constant 0.000000e+00 : f32
    %117 = vector.broadcast %cst_49 : f32 to vector<64x128xf32>
    %118 = vector.broadcast %cst_50 : f32 to vector<64x128xf32>
    %119 = arith.select %116, %117, %118 : vector<64x128xi1>, vector<64x128xf32>
    %cst_51 = arith.constant dense<0.000000e+00> : vector<100x128xf32>
    %120 = tpu.matmul %90, %119, %cst_51 {dimension_numbers = #tpu.dot_dimension_numbers<[1], [0], [0], [1], [0, 0, 1, 1], [], []>} : vector<100x64xf32>, vector<64x128xf32>, vector<100x128xf32> -> vector<100x128xf32>
    %cst_52 = arith.constant dense<0.000000e+00> : vector<100x128xf32>
    %121 = tpu.matmul %113, %2, %cst_52 {dimension_numbers = #tpu.dot_dimension_numbers<[1], [0], [0], [1], [0, 0, 1, 1], [], []>} : vector<100x8xf32>, vector<8x128xf32>, vector<100x128xf32> -> vector<100x128xf32>
    %122 = arith.addf %120, %121 : vector<100x128xf32>
    %123 = vector.broadcast %9 : vector<1x128xf32> to vector<100x128xf32>
    %124 = arith.addf %122, %123 : vector<100x128xf32>
    %c0_53 = arith.constant 0 : index
    %c0_54 = arith.constant 0 : index
    %c0_55 = arith.constant 0 : index
    %125 = vector.load %arg5[%c0_53, %c0_54, %c0_55] : memref<1x100x128xf32, #tpu.memory_space<vmem>>, vector<1x100x128xf32>
    %126 = vector.shape_cast %125 : vector<1x100x128xf32> to vector<100x128xf32>
    %127 = vector.shape_cast %124 : vector<100x128xf32> to vector<1x100x128xf32>
    tpu.vector_store %arg5[%c0_53, %c0_54, %c0_55], %127 {strides = array<i32>} : memref<1x100x128xf32, #tpu.memory_space<vmem>>, vector<1x100x128xf32>,
    return
  }
  func.func @transform_0(%arg0: i32) -> (i32, i32, i32) {
    %c0_i32 = arith.constant 0 : i32
    %c0_i32_0 = arith.constant 0 : i32
    %c0_i32_1 = arith.constant 0 : i32
    return %arg0, %c0_i32, %c0_i32_0 : i32, i32, i32
  }
  func.func @transform_1(%arg0: i32) -> (i32, i32, i32) {
    %c0_i32 = arith.constant 0 : i32
    %c0_i32_0 = arith.constant 0 : i32
    %c0_i32_1 = arith.constant 0 : i32
    return %arg0, %c0_i32, %c0_i32_0 : i32, i32, i32
  }
  func.func @transform_2(%arg0: i32) -> (i32, i32) {
    %c0_i32 = arith.constant 0 : i32
    %c0_i32_0 = arith.constant 0 : i32
    %c0_i32_1 = arith.constant 0 : i32
    return %c0_i32, %c0_i32_0 : i32, i32
  }
  func.func @transform_3(%arg0: i32) -> (i32, i32) {
    %c0_i32 = arith.constant 0 : i32
    %c0_i32_0 = arith.constant 0 : i32
    %c0_i32_1 = arith.constant 0 : i32
    return %c0_i32, %c0_i32_0 : i32, i32
  }
  func.func @transform_4(%arg0: i32) -> (i32, i32, i32) {
    %c0_i32 = arith.constant 0 : i32
    %c0_i32_0 = arith.constant 0 : i32
    %c0_i32_1 = arith.constant 0 : i32
    return %arg0, %c0_i32, %c0_i32_0 : i32, i32, i32
  }
}

</mosaic_0001>

<bundles_post_ra>
// kernel: tpu_custom_call.1
= control target key start
LH: loop header
LB: loop body
LE: loop exit
PB: predicated region body
PF: predicated region fallthrough
CT: control target
= control target key end

     0   :  { %s2245_s15 = smov 0   ;;  %s3085_s0 = inlined_call_operand.vmem [shape: f32[2,100,4], index: 0, kind: input, shape index: {}]   ;;  %s3086_s1 = inlined_call_operand.vmem [shape: f32[2,100,64], index: 1, kind: input, shape index: {}]   ;;  %s3087_s2 = inlined_call_operand.vmem [shape: f32[100,64], index: 2, kind: input, shape index: {}]   ;;  %s3088_s3 = inlined_call_operand.vmem [shape: f32[56,128], index: 3, kind: input, shape index: {}]   ;;  %s3089_s4 = inlined_call_operand.vmem [shape: f32[2,100,128], index: 4, kind: output, shape index: {}]  }
   0x1 LB: > { %s1881_s16 = sadd.s32 4294967295, %s2216_s15   ;;  %p1885_p0 = scmp.ge.s32.totalorder %s2216_s15, 1  ;;  %s2216_s15 = sphi %s2245_s15, %s14_s15  }
   0x2   : > { %p172_p1 = scmp.lt.s32.totalorder %s2216_s15, 3 }
   0x4   : > { %p173_p2 = pnand %p1885_p0, %p172_p1 }
   0x5   : > { %p203_p3 = scmp.lt.s32.totalorder (!%p173_p2), %s1881_s16, 1 }
   0x6   : > { %176 = sbr.rel (%p173_p2) target bundleno = 916 (0x394), region = 36 }
   0xb   : > { %v228_v0 = vld [vmem:[%s3088_s3 + $0x20] sm:$0xf]  ;;  %vm284_vm0 = vcmask 1043456   ;;  %s3091_s16 = smov (!%p203_p3, %s1881_s16), 1  ;;  %vm244_vm1 = vcmask 31744   ;;  %v404_v39 = vlaneseq  ;;  %v2218_v52 = vmov 0.0  }
   0xc   : > { %1889 = vmatpush.msk.msra.mxu0 %vm284_vm0, %v228_v0  ;;  %2042 = vmatpush.msk.msra.mxu2 %vm284_vm0, %v228_v0  ;;  %s2258_s19 = smul.u32 104, %s3091_s16  ;;  %v229_v14 = vld [vmem:[%s3088_s3 + $0x28] sm:$0xf]  ;;  %v2297_v18 = vld [vmem:[%s3088_s3 + $0x1a] ss:$0 sm:$0xff]  ;;  %vm474_vm5 = vcmask 818176  }
   0xd   : > { %2043 = vmatpush.msk.msra.mxu3 %vm284_vm0, %v229_v14  ;;  %1903 = vmatpush.msk.msra.mxu1 %vm284_vm0, %v229_v14  ;;  %v2305_v21 = vld [vmem:[%s3088_s3 + $0x33] ss:$0 sm:$0xff]  ;;  %v2367_v42 = vshrl.u32 %v404_v39, 7  ;;  %v2369_v43 = vand.u32 127, %v404_v39 }
   0xe   : > { %s207_s22 = scalar_lea.vmem %s3085_s0, %s2258_s19  ;;  %s2832_s23 = scalar_lea.vmem %s3086_s1, %s2258_s19 }
   0xf   : > { %v230_v1 = vld [vmem:[%s207_s22] sm:$0xff]  ;;  %v231_v3 = vld [vmem:[%s207_s22 + $0x8] sm:$0xff]  ;;  %v232_v5 = vld [vmem:[%s207_s22 + $0x10] sm:$0xff]  ;;  %v420_v46 = vsub.s32 %v2367_v42, %v2369_v43  ;;  %v2398_v49 = vadd.s32 8, %v2367_v42  ;;  %v2428_v57 = vadd.s32 16, %v2367_v42  ;;  %v2443_v62 = vadd.s32 24, %v2367_v42  ;;  %s3054_s10 = scalar_lea.vmem %s3089_s4, %s2258_s19 }
  0x10   : > { %v238_v2 = vld [vmem:[%s207_s22 + $0x40] sm:$0xff]  ;;  %1890 = vmatmul.msk.f32.vlgmr.msra.gmra.mxu0 %vm244_vm1, %v230_v1  ;;  %v239_v4 = vld [vmem:[%s207_s22 + $0x48] sm:$0xff]  ;;  %v240_v6 = vld [vmem:[%s207_s22 + $0x50] sm:$0xff]  ;;  %1904 = vmatmul.msk.f32.vlgmr.msra.gmra.mxu1 %vm244_vm1, %v230_v1  ;;  %v415_v39 = vadd.s32 80, %v2367_v42 }
  0x11   : > { %1898 = vmatmul.msk.f32.vlgmr.msra.gmra.mxu2 %vm244_vm1, %v238_v2  ;;  %v233_v7 = vld [vmem:[%s207_s22 + $0x18] sm:$0xff]  ;;  %v234_v9 = vld [vmem:[%s207_s22 + $0x20] sm:$0xff]  ;;  %v235_v11 = vld [vmem:[%s207_s22 + $0x28] sm:$0xff]  ;;  %vm448_vm2 = vcmp.eq.s32.totalorder %v420_v46, 1  ;;  %vm601_vm3 = vcmp.eq.s32.totalorder %v420_v46, 2  ;;  %vm750_vm4 = vcmp.eq.s32.totalorder %v420_v46, 3  ;;  %v421_v55 = vsub.s32 %v2398_v49, %v2369_v43 }
  0x12   : > { %v241_v8 = vld [vmem:[%s207_s22 + $0x58] sm:$0xff]  ;;  %v242_v10 = vld [vmem:[%s207_s22 + $0x60] sm:$0xf]  ;;  %v236_v12 = vld [vmem:[%s207_s22 + $0x30] sm:$0xff]  ;;  %v461_v53 = vsel %vm448_vm2, 1.0, %v2218_v52  ;;  %v614_v54 = vsel %vm601_vm3, 1.0, %v2218_v52  ;;  %v422_v60 = vsub.s32 %v2428_v57, %v2369_v43  ;;  %v423_v1 = vsub.s32 %v2443_v62, %v2369_v43 }
  0x13   : > { %v237_v13 = vld [vmem:[%s207_s22 + $0x38] sm:$0xff]  ;;  %v763_v56 = vsel %vm750_vm4, 1.0, %v2218_v52  ;;  %vm449_vm6 = vcmp.eq.s32.totalorder %v421_v55, 1  ;;  %vm602_vm7 = vcmp.eq.s32.totalorder %v421_v55, 2  ;;  %vm751_vm8 = vcmp.eq.s32.totalorder %v421_v55, 3 }
  0x14   : > { %1911 = vmatmul.msk.f32.vlgmr.msra.gmra.mxu3 %vm244_vm1, %v237_v13  ;;  %v462_v58 = vsel %vm449_vm6, 1.0, %v2218_v52  ;;  %v615_v59 = vsel %vm602_vm7, 1.0, %v2218_v52  ;;  %v764_v61 = vsel %vm751_vm8, 1.0, %v2218_v52  ;;  %vm450_vm9 = vcmp.eq.s32.totalorder %v422_v60, 1 }
  0x15   : > { %vm603_vm10 = vcmp.eq.s32.totalorder %v422_v60, 2  ;;  %vm752_vm11 = vcmp.eq.s32.totalorder %v422_v60, 3  ;;  %v463_v63 = vsel %vm450_vm9, 1.0, %v2218_v52  ;;  %vm451_vm12 = vcmp.eq.s32.totalorder %v423_v1, 1 }
  0x16   : > { %v616_v0 = vsel %vm603_vm10, 1.0, %v2218_v52  ;;  %vm604_vm13 = vcmp.eq.s32.totalorder %v423_v1, 2  ;;  %vm753_vm14 = vcmp.eq.s32.totalorder %v423_v1, 3 }
  0x18   : > { %1891 = vmatmul.msk.f32.gmra.mxu0 %vm244_vm1, %v231_v3  ;;  %1905 = vmatmul.msk.f32.gmra.mxu1 %vm244_vm1, %v231_v3  ;;  %v2458_v3 = vadd.s32 32, %v2367_v42 }
  0x19   : > { %1899 = vmatmul.msk.f32.gmra.mxu2 %vm244_vm1, %v239_v4 }
  0x1c   : > { %1912 = vmatmul.msk.f32.gmra.mxu3 %vm244_vm1, %v238_v2  ;;  %v765_v2 = vsel %vm752_vm11, 1.0, %v2218_v52 }
  0x20   : > { %1892 = vmatmul.msk.f32.gmra.mxu0 %vm244_vm1, %v232_v5  ;;  %1906 = vmatmul.msk.f32.gmra.mxu1 %vm244_vm1, %v232_v5  ;;  %v617_v5 = vsel %vm604_vm13, 1.0, %v2218_v52 }
  0x21   : > { %1900 = vmatmul.msk.f32.gmra.mxu2 %vm244_vm1, %v240_v6 }
  0x24   : > { %1913 = vmatmul.msk.f32.gmra.mxu3 %vm244_vm1, %v239_v4  ;;  %v464_v4 = vsel %vm451_vm12, 1.0, %v2218_v52 }
  0x28   : > { %1893 = vmatmul.msk.f32.gmra.mxu0 %vm244_vm1, %v233_v7  ;;  %1907 = vmatmul.msk.f32.gmra.mxu1 %vm244_vm1, %v233_v7  ;;  %v766_v7 = vsel %vm753_vm14, 1.0, %v2218_v52 }
  0x29   : > { %1901 = vmatmul.msk.f32.gmra.mxu2 %vm244_vm1, %v241_v8 }
  0x2c   : > { %1914 = vmatmul.msk.f32.gmra.mxu3 %vm244_vm1, %v240_v6  ;;  %v424_v6 = vsub.s32 %v2458_v3, %v2369_v43 }
  0x2e   : > { %vm452_vm15 = vcmp.eq.s32.totalorder %v424_v6, 1 }
  0x30   : > { %1894 = vmatmul.msk.f32.gmra.mxu0 %vm244_vm1, %v234_v9  ;;  %1908 = vmatmul.msk.f32.gmra.mxu1 %vm244_vm1, %v234_v9  ;;  %v465_v9 = vsel %vm452_vm15, 1.0, %v2218_v52 }
  0x31   : > { %1902 = vmatmul.msk.f32.gmra.mxu2 %vm244_vm1, %v242_v10 }
  0x34   : > { %1915 = vmatmul.msk.f32.gmra.mxu3 %vm244_vm1, %v241_v8  ;;  %v2473_v8 = vadd.s32 40, %v2367_v42 }
  0x38   : > { %1895 = vmatmul.msk.f32.gmra.mxu0 %vm244_vm1, %v235_v11  ;;  %1909 = vmatmul.msk.f32.gmra.mxu1 %vm244_vm1, %v235_v11  ;;  %v425_v11 = vsub.s32 %v2473_v8, %v2369_v43 }
  0x3a   : > { %vm453_vm2 = vcmp.eq.s32.totalorder %v425_v11, 1  ;;  %vm606_vm3 = vcmp.eq.s32.totalorder %v425_v11, 2  ;;  %vm755_vm4 = vcmp.eq.s32.totalorder %v425_v11, 3 }
  0x3b   : > { %v466_v14 = vsel %vm453_vm2, 1.0, %v2218_v52 }
  0x3c   : > { %1916 = vmatmul.msk.f32.gmra.mxu3 %vm244_vm1, %v242_v10 }
  0x40   : > { %1896 = vmatmul.msk.f32.gmra.mxu0 %vm244_vm1, %v236_v12  ;;  %1910 = vmatmul.msk.f32.gmra.mxu1 %vm244_vm1, %v236_v12 }
  0x48   : > { %1897 = vmatmul.msk.f32.gmra.mxu0 %vm244_vm1, %v237_v13  ;;  %vm754_vm1 = vcmp.eq.s32.totalorder %v424_v6, 3  ;;  %v2484_v13 = vadd.s32 48, %v2367_v42 }
  0x49   : > { %v767_v12 = vsel %vm754_vm1, 1.0, %v2218_v52 }
  0x8d   : > { %v2286_v15 = vpop.f32.mrf.mxu0 }
  0x8e   : > { %v2409_v51 = vadd.f32 %v2297_v18, %v2286_v15  ;;  %v619_v15 = vsel %vm606_vm3, 1.0, %v2218_v52 }
  0x94   : > { %v329_v16 = vpop.f32.mrf.mxu2 }
  0x95   : > { %v2290_v17 = vpop.f32.mrf.mxu0  ;;  %v2350_v36 = vadd.f32 %v2297_v18, %v329_v16  ;;  %v426_v16 = vsub.s32 %v2484_v13, %v2369_v43 }
  0x96   : > { %v2402_v50 = vadd.f32 %v2297_v18, %v2290_v17  ;;  %v768_v17 = vsel %vm755_vm4, 1.0, %v2218_v52 }
  0x97   : > { %vm454_vm6 = vcmp.eq.s32.totalorder %v426_v16, 1  ;;  %vm607_vm7 = vcmp.eq.s32.totalorder %v426_v16, 2  ;;  %vm756_vm8 = vcmp.eq.s32.totalorder %v426_v16, 3  ;;  %v218_v16 = vld [vmem:[%s3088_s3] sm:$0xff] }
  0x98   : > { %1033 = vmatpush.msrb.mxu1 %v218_v16 }
  0x9c   : > { %v332_v19 = vpop.f32.mrf.mxu2 }
  0x9d   : > { %v2300_v20 = vadd.f32 %v2297_v18, %v332_v19  ;;  %v311_v22 = vpop.f32.mrf.mxu0  ;;  %v467_v19 = vsel %vm454_vm6, 1.0, %v2218_v52 }
  0x9e   : > { %v2392_v48 = vadd.f32 %v2297_v18, %v311_v22 }
  0x9f   : > { %v2309_v23 = vmul.f32 %v2305_v21, %v2300_v20 }
  0xa4   : > { %v335_v24 = vpop.f32.mrf.mxu2 }
  0xa5   : > { %v2314_v25 = vadd.f32 %v2297_v18, %v335_v24  ;;  %v314_v26 = vpop.f32.mrf.mxu0  ;;  %v769_v24 = vsel %vm756_vm8, 1.0, %v2218_v52 }
  0xa6   : > { %v2386_v47 = vadd.f32 %v2297_v18, %v314_v26 }
  0xa7   : > { %v2318_v27 = vmul.f32 %v2305_v21, %v2314_v25 }
  0xac   : > { %v338_v28 = vpop.f32.mrf.mxu2 }
  0xad   : > { %v2323_v29 = vadd.f32 %v2297_v18, %v338_v28  ;;  %v317_v30 = vpop.f32.mrf.mxu0 }
  0xae   : > { %v2378_v45 = vadd.f32 %v2297_v18, %v317_v30 }
  0xaf   : > { %v2327_v31 = vmul.f32 %v2305_v21, %v2323_v29 }
  0xb4   : > { %v341_v32 = vpop.f32.mrf.mxu2 }
  0xb5   : > { %v2331_v33 = vadd.f32 %v2297_v18, %v341_v32  ;;  %v320_v34 = vpop.f32.mrf.mxu0  ;;  %v414_v32 = vadd.s32 72, %v2367_v42 }
  0xb6   : > { %v2372_v44 = vadd.f32 %v2297_v18, %v320_v34 }
  0xb7   : > { %1917 = vmatpush.msk.msrb.mxu2 %vm284_vm0, %v2331_v33  ;;  %1931 = vmatpush.msk.msrb.mxu3 %vm284_vm0, %v2331_v33  ;;  %v2339_v35 = vmul.f32 %v2305_v21, %v2331_v33 }
  0xb8   : > { %1945 = vmatpush.msk.msrb.mxu0 %vm284_vm0, %v2331_v33 }
  0xb9   : > { %521 = vmatpush.msrb.mxu2 %v2323_v29  ;;  %670 = vmatpush.msrb.mxu3 %v2323_v29 }
  0xba   : > { %819 = vmatpush.msrb.mxu0 %v2323_v29 }
  0xbb   : > { %522 = vmatpush.msrb.mxu2 %v2314_v25  ;;  %671 = vmatpush.msrb.mxu3 %v2314_v25 }
  0xbc   : > { %820 = vmatpush.msrb.mxu0 %v2314_v25 }
  0xbd   : > { %523 = vmatpush.msrb.mxu2 %v2300_v20  ;;  %672 = vmatpush.msrb.mxu3 %v2300_v20  ;;  %v323_v37 = vpop.f32.mrf.mxu0 }
  0xbe   : > { %821 = vmatpush.msrb.mxu0 %v2300_v20  ;;  %v2362_v41 = vadd.f32 %v2297_v18, %v323_v37  ;;  %v429_v37 = vsub.s32 %v414_v32, %v2369_v43 }
  0xbf   : > { %524 = vmatpush.msrb.mxu2 %v2350_v36  ;;  %673 = vmatpush.msrb.mxu3 %v2350_v36 }
  0xc0   : > { %822 = vmatpush.msrb.mxu0 %v2350_v36  ;;  %vm457_vm15 = vcmp.eq.s32.totalorder %v429_v37, 1  ;;  %vm759_vm1 = vcmp.eq.s32.totalorder %v429_v37, 3 }
  0xc1   : > { %v470_v46 = vsel %vm457_vm15, 1.0, %v2218_v52  ;;  %v772_v55 = vsel %vm759_vm1, 1.0, %v2218_v52  ;;  %vm1586_vm1 = vcmp.eq.s32.totalorder %v2473_v8, %v2369_v43 }
  0xc5   : > { %v326_v38 = vpop.f32.mrf.mxu0 }
  0xc6   : > { %v2359_v40 = vadd.f32 %v2297_v18, %v326_v38  ;;  %v2495_v18 = vadd.s32 56, %v2367_v42 }
  0xc8   : > { %525 = vmatpush.msrb.mxu2 %v2359_v40  ;;  %674 = vmatpush.msrb.mxu3 %v2359_v40  ;;  %v427_v22 = vsub.s32 %v2495_v18, %v2369_v43  ;;  %vm1588_vm15 = vcmp.eq.s32.totalorder %v2495_v18, %v2369_v43 }
  0xc9   : > { %823 = vmatpush.msrb.mxu0 %v2359_v40 }
  0xca   : > { %526 = vmatpush.msrb.mxu2 %v2362_v41  ;;  %675 = vmatpush.msrb.mxu3 %v2362_v41  ;;  %vm455_vm9 = vcmp.eq.s32.totalorder %v427_v22, 1  ;;  %vm608_vm10 = vcmp.eq.s32.totalorder %v427_v22, 2  ;;  %vm757_vm11 = vcmp.eq.s32.totalorder %v427_v22, 3  ;;  %v2582_v22 = vld [vmem:[%s3088_s3 + $0x30] ss:$0 sm:$0xff] }
  0xcb   : > { %824 = vmatpush.msrb.mxu0 %v2362_v41  ;;  %v468_v26 = vsel %vm455_vm9, 1.0, %v2218_v52  ;;  %v621_v28 = vsel %vm608_vm10, 1.0, %v2218_v52  ;;  %v770_v30 = vsel %vm757_vm11, 1.0, %v2218_v52 }
  0xcc   : > { %527 = vmatpush.msrb.mxu2 %v2372_v44  ;;  %676 = vmatpush.msrb.mxu3 %v2372_v44 }
  0xcd   : > { %825 = vmatpush.msrb.mxu0 %v2372_v44 }
  0xce   : > { %528 = vmatpush.msrb.mxu2 %v2378_v45  ;;  %677 = vmatpush.msrb.mxu3 %v2378_v45 }
  0xcf   : > { %826 = vmatpush.msrb.mxu0 %v2378_v45 }
  0xd0   : > { %529 = vmatpush.msrb.mxu2 %v2386_v47  ;;  %678 = vmatpush.msrb.mxu3 %v2386_v47 }
  0xd1   : > { %827 = vmatpush.msrb.mxu0 %v2386_v47 }
  0xd2   : > { %530 = vmatpush.msrb.mxu2 %v2392_v48  ;;  %679 = vmatpush.msrb.mxu3 %v2392_v48 }
  0xd3   : > { %828 = vmatpush.msrb.mxu0 %v2392_v48 }
  0xd4   : > { %531 = vmatpush.msrb.mxu2 %v2402_v50  ;;  %680 = vmatpush.msrb.mxu3 %v2402_v50 }
  0xd5   : > { %829 = vmatpush.msrb.mxu0 %v2402_v50 }
  0xd6   : > { %532 = vmatpush.msrb.mxu2 %v2409_v51  ;;  %681 = vmatpush.msrb.mxu3 %v2409_v51 }
  0xd7   : > { %830 = vmatpush.msrb.mxu0 %v2409_v51  ;;  %1918 = vmatmul.msk.f32.vlgmr.msrb.gmra.mxu2 %vm474_vm5, %v461_v53 }
  0xd8   : > { %2044 = vmatpush.msk.msra.mxu2 %vm284_vm0, %v2331_v33  ;;  %1932 = vmatmul.msk.f32.vlgmr.msrb.gmra.mxu3 %vm474_vm5, %v614_v54  ;;  %vm605_vm0 = vcmp.eq.s32.totalorder %v424_v6, 2  ;;  %v430_v54 = vsub.s32 %v415_v39, %v2369_v43 }
  0xd9   : > { %1946 = vmatmul.msk.f32.vlgmr.msrb.gmra.mxu0 %vm474_vm5, %v763_v56  ;;  %v618_v10 = vsel %vm605_vm0, 1.0, %v2218_v52  ;;  %vm610_vm0 = vcmp.eq.s32.totalorder %v429_v37, 2  ;;  %v2529_v56 = vpop.f32.mrf.mxu3  ;;  %v2592_v37 = vld [vmem:[%s3088_s3 + $0x1c] ss:$0 sm:$0xff] }
  0xda   : > { %2045 = vmatpush.msra.mxu2 %v2323_v29  ;;  %v623_v53 = vsel %vm610_vm0, 1.0, %v2218_v52  ;;  %vm458_vm2 = vcmp.eq.s32.totalorder %v430_v54, 1  ;;  %vm611_vm3 = vcmp.eq.s32.totalorder %v430_v54, 2  ;;  %vm760_vm4 = vcmp.eq.s32.totalorder %v430_v54, 3 }
  0xdb   : > { %v624_v60 = vsel %vm611_vm3, 1.0, %v2218_v52  ;;  %vm1587_vm0 = vcmp.eq.s32.totalorder %v2484_v13, %v2369_v43 }
  0xdc   : > { %2046 = vmatpush.msra.mxu2 %v2314_v25  ;;  %v413_v25 = vadd.s32 64, %v2367_v42 }
  0xde   : > { %2047 = vmatpush.msra.mxu2 %v2300_v20  ;;  %v620_v20 = vsel %vm607_vm7, 1.0, %v2218_v52  ;;  %v428_v29 = vsub.s32 %v413_v25, %v2369_v43  ;;  %v435_v25 = vmul.f32 %v2305_v21, %v2409_v51 }
  0xdf   : > { %1919 = vmatmul.msk.f32.gmra.mxu2 %vm474_vm5, %v462_v58  ;;  %v416_v58 = vadd.s32 88, %v2367_v42 }
  0xe0   : > { %2048 = vmatpush.msra.mxu2 %v2350_v36  ;;  %1933 = vmatmul.msk.f32.gmra.mxu3 %vm474_vm5, %v615_v59  ;;  %vm456_vm12 = vcmp.eq.s32.totalorder %v428_v29, 1  ;;  %vm609_vm13 = vcmp.eq.s32.totalorder %v428_v29, 2  ;;  %vm758_vm14 = vcmp.eq.s32.totalorder %v428_v29, 3  ;;  %v471_v59 = vsel %vm458_vm2, 1.0, %v2218_v52 }
  0xe1   : > { %1947 = vmatmul.msk.f32.gmra.mxu0 %vm474_vm5, %v764_v61  ;;  %v469_v33 = vsel %vm456_vm12, 1.0, %v2218_v52  ;;  %v622_v34 = vsel %vm609_vm13, 1.0, %v2218_v52  ;;  %v771_v38 = vsel %vm758_vm14, 1.0, %v2218_v52  ;;  %v431_v61 = vsub.s32 %v416_v58, %v2369_v43  ;;  %v2540_v1 = vpop.f32.mrf.mxu3 }
  0xe2   : > { %2049 = vmatpush.msra.mxu2 %v2359_v40  ;;  %vm1585_vm2 = vcmp.eq.s32.totalorder %v2458_v3, %v2369_v43 }
  0xe3   : > { %vm459_vm6 = vcmp.eq.s32.totalorder %v431_v61, 1  ;;  %vm612_vm7 = vcmp.eq.s32.totalorder %v431_v61, 2  ;;  %vm761_vm8 = vcmp.eq.s32.totalorder %v431_v61, 3 }
  0xe4   : > { %2050 = vmatpush.msra.mxu2 %v2362_v41  ;;  %v774_v6 = vsel %vm761_vm8, 1.0, %v2218_v52 }
  0xe6   : > { %2051 = vmatpush.msra.mxu2 %v2372_v44 }
  0xe7   : > { %1920 = vmatmul.msk.f32.gmra.mxu2 %vm474_vm5, %v463_v63  ;;  %v773_v63 = vsel %vm760_vm4, 1.0, %v2218_v52  ;;  %vm1584_vm4 = vcmp.eq.s32.totalorder %v2443_v62, %v2369_v43 }
  0xe8   : > { %2052 = vmatpush.msra.mxu2 %v2378_v45  ;;  %1934 = vmatmul.msk.f32.gmra.mxu3 %vm474_vm5, %v616_v0  ;;  %v417_v0 = vadd.s32 96, %v2367_v42 }
  0xe9   : > { %1948 = vmatmul.msk.f32.gmra.mxu0 %vm474_vm5, %v765_v2  ;;  %v472_v2 = vsel %vm459_vm6, 1.0, %v2218_v52 }
  0xea   : > { %2053 = vmatpush.msra.mxu2 %v2386_v47 }
  0xec   : > { %2054 = vmatpush.msra.mxu2 %v2392_v48 }
  0xee   : > { %2055 = vmatpush.msra.mxu2 %v2402_v50 }
  0xef   : > { %1921 = vmatmul.msk.f32.gmra.mxu2 %vm474_vm5, %v464_v4  ;;  %v625_v4 = vsel %vm612_vm7, 1.0, %v2218_v52  ;;  %vm1583_vm7 = vcmp.eq.s32.totalorder %v2428_v57, %v2369_v43 }
  0xf0   : > { %2056 = vmatpush.msra.mxu2 %v2409_v51  ;;  %1935 = vmatmul.msk.f32.gmra.mxu3 %vm474_vm5, %v617_v5  ;;  %v432_v5 = vsub.s32 %v417_v0, %v2369_v43  ;;  %v436_v51 = vmul.f32 %v2305_v21, %v2402_v50 }
  0xf1   : > { %1949 = vmatmul.msk.f32.gmra.mxu0 %vm474_vm5, %v766_v7 }
  0xf2   : > { %vm460_vm9 = vcmp.eq.s32.totalorder %v432_v5, 1  ;;  %vm613_vm10 = vcmp.eq.s32.totalorder %v432_v5, 2  ;;  %vm762_vm11 = vcmp.eq.s32.totalorder %v432_v5, 3  ;;  %v437_v5 = vmul.f32 %v2305_v21, %v2392_v48 }
  0xf3   : > { %v473_v7 = vsel %vm460_vm9, 1.0, %v2218_v52  ;;  %v775_v11 = vsel %vm762_vm11, 1.0, %v2218_v52  ;;  %vm1582_vm9 = vcmp.eq.s32.totalorder %v2398_v49, %v2369_v43  ;;  %vm1581_vm11 = vcmp.eq.s32.totalorder %v2367_v42, %v2369_v43 }
  0xf7   : > { %1922 = vmatmul.msk.f32.gmra.mxu2 %vm474_vm5, %v465_v9  ;;  %v626_v9 = vsel %vm613_vm10, 1.0, %v2218_v52  ;;  %v2572_v52 = vld [vmem:[%s3088_s3 + $0x32] ss:$0 sm:$0xff] }
  0xf8   : > { %1936 = vmatmul.msk.f32.gmra.mxu3 %vm474_vm5, %v618_v10  ;;  %v2551_v10 = vpop.f32.mrf.mxu3 }
  0xf9   : > { %1950 = vmatmul.msk.f32.gmra.mxu0 %vm474_vm5, %v767_v12 }
  0xff   : > { %1923 = vmatmul.msk.f32.gmra.mxu2 %vm474_vm5, %v466_v14 }
 0x100   : > { %1937 = vmatmul.msk.f32.gmra.mxu3 %vm474_vm5, %v619_v15  ;;  %v2557_v12 = vpop.f32.mrf.mxu3 }
 0x101   : > { %1951 = vmatmul.msk.f32.gmra.mxu0 %vm474_vm5, %v768_v17  ;;  %v219_v17 = vld [vmem:[%s3088_s3 + $0x8] sm:$0xff] }
 0x102   : > { %1090 = vmatpush.msrb.mxu2 %v219_v17 }
 0x107   : > { %1924 = vmatmul.msk.f32.gmra.mxu2 %vm474_vm5, %v467_v19 }
 0x108   : > { %1938 = vmatmul.msk.f32.gmra.mxu3 %vm474_vm5, %v620_v20  ;;  %v2559_v14 = vpop.f32.mrf.mxu3  ;;  %v2577_v20 = vld [vmem:[%s3088_s3 + $0x31] ss:$0 sm:$0xff] }
 0x109   : > { %1952 = vmatmul.msk.f32.gmra.mxu0 %vm474_vm5, %v769_v24 }
 0x10f   : > { %1925 = vmatmul.msk.f32.gmra.mxu2 %vm474_vm5, %v468_v26 }
 0x110   : > { %1939 = vmatmul.msk.f32.gmra.mxu3 %vm474_vm5, %v621_v28  ;;  %v2561_v15 = vpop.f32.mrf.mxu3 }
 0x111   : > { %1953 = vmatmul.msk.f32.gmra.mxu0 %vm474_vm5, %v770_v30 }
 0x117   : > { %1926 = vmatmul.msk.f32.gmra.mxu2 %vm474_vm5, %v469_v33 }
 0x118   : > { %1940 = vmatmul.msk.f32.gmra.mxu3 %vm474_vm5, %v622_v34 }
 0x119   : > { %1954 = vmatmul.msk.f32.gmra.mxu0 %vm474_vm5, %v771_v38 }
 0x11f   : > { %1927 = vmatmul.msk.f32.gmra.mxu2 %vm474_vm5, %v470_v46 }
 0x120   : > { %1941 = vmatmul.msk.f32.gmra.mxu3 %vm474_vm5, %v623_v53 }
 0x121   : > { %1955 = vmatmul.msk.f32.gmra.mxu0 %vm474_vm5, %v772_v55 }
 0x127   : > { %1928 = vmatmul.msk.f32.gmra.mxu2 %vm474_vm5, %v471_v59 }
 0x128   : > { %1942 = vmatmul.msk.f32.gmra.mxu3 %vm474_vm5, %v624_v60 }
 0x129   : > { %1956 = vmatmul.msk.f32.gmra.mxu0 %vm474_vm5, %v773_v63 }
 0x12f   : > { %1929 = vmatmul.msk.f32.gmra.mxu2 %vm474_vm5, %v472_v2 }
 0x130   : > { %1943 = vmatmul.msk.f32.gmra.mxu3 %vm474_vm5, %v625_v4 }
 0x131   : > { %1957 = vmatmul.msk.f32.gmra.mxu0 %vm474_vm5, %v774_v6 }
 0x137   : > { %1930 = vmatmul.msk.f32.gmra.mxu2 %vm474_vm5, %v473_v7 }
 0x138   : > { %1944 = vmatmul.msk.f32.gmra.mxu3 %vm474_vm5, %v626_v9 }
 0x13f   : > { %1958 = vmatmul.msk.f32.vlgmr.msra.gmra.mxu2 %vm474_vm5, %v775_v11  ;;  %vm978_vm5 = vcmask 64512  }
 0x156   : > { %v832_v19 = vpop.f32.mrf.mxu0 }
 0x157   : > { %v873_v32 = vmul.f32 %v2582_v22, %v832_v19 }
 0x15a   : > { %v534_v24 = vpop.f32.mrf.mxu2 }
 0x15b   : > { %v575_v26 = vmul.f32 %v2572_v52, %v534_v24  ;;  %v683_v28 = vpop.f32.mrf.mxu3 }
 0x15c   : > { %v724_v29 = vmul.f32 %v2577_v20, %v683_v28 }
 0x15d   : > { %v588_v30 = vadd.f32 %v575_v26, %v435_v25 }
 0x15e   : > { %v835_v33 = vpop.f32.mrf.mxu0 }
 0x15f   : > { %v737_v34 = vadd.f32 %v724_v29, %v588_v30  ;;  %v874_v60 = vmul.f32 %v2582_v22, %v835_v33 }
 0x161   : > { %v886_v38 = vadd.f32 %v873_v32, %v737_v34  ;;  %v438_v32 = vmul.f32 %v2305_v21, %v2386_v47 }
 0x162   : > { %v537_v39 = vpop.f32.mrf.mxu2 }
 0x163   : > { %v900_v46 = vadd.f32 %v2592_v37, %v886_v38  ;;  %v576_v53 = vmul.f32 %v2572_v52, %v537_v39  ;;  %v686_v54 = vpop.f32.mrf.mxu3 }
 0x164   : > { %v725_v55 = vmul.f32 %v2577_v20, %v686_v54 }
 0x165   : > { %v913_v58 = vmul.f32 0.5, %v900_v46  ;;  %v589_v59 = vadd.f32 %v576_v53, %v436_v51 }
 0x166   : > { %v838_v61 = vpop.f32.mrf.mxu0 }
 0x167   : > { %2078 = vtanh.f32 %v913_v58  ;;  %v738_v63 = vadd.f32 %v725_v55, %v589_v59  ;;  %v875_v17 = vmul.f32 %v2582_v22, %v838_v61 }
 0x169   : > { %v887_v0 = vadd.f32 %v874_v60, %v738_v63 }
 0x16a   : > { %v540_v2 = vpop.f32.mrf.mxu2 }
 0x16b   : > { %v901_v4 = vadd.f32 %v2592_v37, %v887_v0  ;;  %v577_v50 = vmul.f32 %v2572_v52, %v540_v2  ;;  %v689_v6 = vpop.f32.mrf.mxu3  ;;  %v439_v0 = vmul.f32 %v2305_v21, %v2378_v45 }
 0x16c   : > { %v726_v7 = vmul.f32 %v2577_v20, %v689_v6 }
 0x16d   : > { %v2079_v9 = vpop.eup %2078  ;;  %v914_v11 = vmul.f32 0.5, %v901_v4  ;;  %v590_v16 = vadd.f32 %v577_v50, %v437_v5 }
 0x16e   : > { %v939_v19 = vadd.f32 1.0, %v2079_v9  ;;  %v841_v24 = vpop.f32.mrf.mxu0 }
 0x16f   : > { %2080 = vtanh.f32 %v914_v11  ;;  %v739_v25 = vadd.f32 %v726_v7, %v590_v16  ;;  %v876_v53 = vmul.f32 %v2582_v22, %v841_v24 }
 0x170   : > { %v952_v26 = vmul.f32 0.5, %v939_v19 }
 0x171   : > { %v888_v28 = vadd.f32 %v875_v17, %v739_v25 }
 0x172   : > { %v543_v29 = vpop.f32.mrf.mxu2  ;;  %v2606_v30 = vmul.f32 %v952_v26, %v900_v46 }
 0x173   : > { %v902_v48 = vadd.f32 %v2592_v37, %v888_v28  ;;  %v578_v33 = vmul.f32 %v2572_v52, %v543_v29  ;;  %v692_v34 = vpop.f32.mrf.mxu3  ;;  %v440_v28 = vmul.f32 %v2305_v21, %v2372_v44 }
 0x174   : > { %v727_v38 = vmul.f32 %v2577_v20, %v692_v34  ;;  %1959 = vmatmul.msk.f32.vlgmr.msrb.gmra.mxu1 %vm978_vm5, %v2606_v30  ;;  %1972 = vmatmul.msk.f32.vlgmr.msrb.gmra.mxu2 %vm978_vm5, %v2606_v30 }
 0x175   : > { %v2081_v39 = vpop.eup %2080  ;;  %v915_v51 = vmul.f32 0.5, %v902_v48  ;;  %v591_v46 = vadd.f32 %v578_v33, %v438_v32 }
 0x176   : > { %v940_v54 = vadd.f32 1.0, %v2081_v39  ;;  %v844_v55 = vpop.f32.mrf.mxu0 }
 0x177   : > { %2082 = vtanh.f32 %v915_v51  ;;  %v740_v47 = vadd.f32 %v727_v38, %v591_v46  ;;  %v877_v9 = vmul.f32 %v2582_v22, %v844_v55 }
 0x178   : > { %v953_v58 = vmul.f32 0.5, %v940_v54 }
 0x179   : > { %v889_v59 = vadd.f32 %v876_v53, %v740_v47 }
 0x17a   : > { %v546_v60 = vpop.f32.mrf.mxu2  ;;  %v2618_v61 = vmul.f32 %v953_v58, %v901_v4 }
 0x17b   : > { %v903_v63 = vadd.f32 %v2592_v37, %v889_v59  ;;  %v579_v2 = vmul.f32 %v2572_v52, %v546_v60  ;;  %v695_v5 = vpop.f32.mrf.mxu3  ;;  %v441_v59 = vmul.f32 %v2305_v21, %v2362_v41 }
 0x17c   : > { %v728_v50 = vmul.f32 %v2577_v20, %v695_v5  ;;  %1960 = vmatmul.msk.f32.gmra.mxu1 %vm978_vm5, %v2618_v61  ;;  %1973 = vmatmul.msk.f32.gmra.mxu2 %vm978_vm5, %v2618_v61 }
 0x17d   : > { %v2083_v6 = vpop.eup %2082  ;;  %v916_v7 = vmul.f32 0.5, %v903_v63  ;;  %v592_v4 = vadd.f32 %v579_v2, %v439_v0 }
 0x17e   : > { %v941_v11 = vadd.f32 1.0, %v2083_v6  ;;  %v847_v16 = vpop.f32.mrf.mxu0 }
 0x17f   : > { %2084 = vtanh.f32 %v916_v7  ;;  %v741_v45 = vadd.f32 %v728_v50, %v592_v4  ;;  %v878_v39 = vmul.f32 %v2582_v22, %v847_v16 }
 0x180   : > { %v954_v17 = vmul.f32 0.5, %v941_v11 }
 0x181   : > { %v890_v19 = vadd.f32 %v877_v9, %v741_v45 }
 0x182   : > { %v549_v24 = vpop.f32.mrf.mxu2  ;;  %v2630_v25 = vmul.f32 %v954_v17, %v902_v48 }
 0x183   : > { %v904_v26 = vadd.f32 %v2592_v37, %v890_v19  ;;  %v580_v29 = vmul.f32 %v2572_v52, %v549_v24  ;;  %v698_v32 = vpop.f32.mrf.mxu3  ;;  %v442_v19 = vmul.f32 %v2305_v21, %v2359_v40 }
 0x184   : > { %v729_v33 = vmul.f32 %v2577_v20, %v698_v32  ;;  %1961 = vmatmul.msk.f32.gmra.mxu1 %vm978_vm5, %v2630_v25  ;;  %1974 = vmatmul.msk.f32.gmra.mxu2 %vm978_vm5, %v2630_v25 }
 0x185   : > { %v2085_v34 = vpop.eup %2084  ;;  %v917_v38 = vmul.f32 0.5, %v904_v26  ;;  %v593_v48 = vadd.f32 %v580_v29, %v440_v28 }
 0x186   : > { %v942_v51 = vadd.f32 1.0, %v2085_v34  ;;  %v850_v46 = vpop.f32.mrf.mxu0 }
 0x187   : > { %2086 = vtanh.f32 %v917_v38  ;;  %v742_v44 = vadd.f32 %v729_v33, %v593_v48  ;;  %v879_v6 = vmul.f32 %v2582_v22, %v850_v46 }
 0x188   : > { %v955_v53 = vmul.f32 0.5, %v942_v51 }
 0x189   : > { %v891_v54 = vadd.f32 %v878_v39, %v742_v44 }
 0x18a   : > { %v552_v55 = vpop.f32.mrf.mxu2  ;;  %v2642_v47 = vmul.f32 %v955_v53, %v903_v63 }
 0x18b   : > { %v905_v58 = vadd.f32 %v2592_v37, %v891_v54  ;;  %v581_v60 = vmul.f32 %v2572_v52, %v552_v55  ;;  %v701_v0 = vpop.f32.mrf.mxu3  ;;  %v443_v54 = vmul.f32 %v2305_v21, %v2350_v36 }
 0x18c   : > { %v730_v2 = vmul.f32 %v2577_v20, %v701_v0  ;;  %1962 = vmatmul.msk.f32.gmra.mxu1 %vm978_vm5, %v2642_v47  ;;  %1975 = vmatmul.msk.f32.gmra.mxu2 %vm978_vm5, %v2642_v47 }
 0x18d   : > { %v2087_v5 = vpop.eup %2086  ;;  %v918_v50 = vmul.f32 0.5, %v905_v58  ;;  %v594_v63 = vadd.f32 %v581_v60, %v441_v59 }
 0x18e   : > { %v943_v7 = vadd.f32 1.0, %v2087_v5  ;;  %v853_v4 = vpop.f32.mrf.mxu0 }
 0x18f   : > { %2088 = vtanh.f32 %v918_v50  ;;  %v743_v41 = vadd.f32 %v730_v2, %v594_v63  ;;  %v880_v34 = vmul.f32 %v2582_v22, %v853_v4 }
 0x190   : > { %v956_v9 = vmul.f32 0.5, %v943_v7 }
 0x191   : > { %v892_v11 = vadd.f32 %v879_v6, %v743_v41 }
 0x192   : > { %v555_v16 = vpop.f32.mrf.mxu2  ;;  %v2654_v45 = vmul.f32 %v956_v9, %v904_v26 }
 0x193   : > { %v906_v17 = vadd.f32 %v2592_v37, %v892_v11  ;;  %v582_v24 = vmul.f32 %v2572_v52, %v555_v16  ;;  %v704_v28 = vpop.f32.mrf.mxu3 }
 0x194   : > { %v731_v29 = vmul.f32 %v2577_v20, %v704_v28  ;;  %1963 = vmatmul.msk.f32.gmra.mxu1 %vm978_vm5, %v2654_v45  ;;  %1976 = vmatmul.msk.f32.gmra.mxu2 %vm978_vm5, %v2654_v45 }
 0x195   : > { %v2089_v32 = vpop.eup %2088  ;;  %v919_v33 = vmul.f32 0.5, %v906_v17  ;;  %v595_v26 = vadd.f32 %v582_v24, %v442_v19 }
 0x196   : > { %v944_v38 = vadd.f32 1.0, %v2089_v32  ;;  %v856_v48 = vpop.f32.mrf.mxu0 }
 0x197   : > { %2090 = vtanh.f32 %v919_v33  ;;  %v744_v40 = vadd.f32 %v731_v29, %v595_v26  ;;  %v881_v5 = vmul.f32 %v2582_v22, %v856_v48 }
 0x198   : > { %v957_v39 = vmul.f32 0.5, %v944_v38 }
 0x199   : > { %v893_v51 = vadd.f32 %v880_v34, %v744_v40 }
 0x19a   : > { %v558_v46 = vpop.f32.mrf.mxu2  ;;  %v2666_v44 = vmul.f32 %v957_v39, %v905_v58 }
 0x19b   : > { %v907_v53 = vadd.f32 %v2592_v37, %v893_v51  ;;  %v583_v55 = vmul.f32 %v2572_v52, %v558_v46  ;;  %v707_v59 = vpop.f32.mrf.mxu3 }
 0x19c   : > { %v732_v60 = vmul.f32 %v2577_v20, %v707_v59  ;;  %1964 = vmatmul.msk.f32.gmra.mxu1 %vm978_vm5, %v2666_v44  ;;  %1977 = vmatmul.msk.f32.gmra.mxu2 %vm978_vm5, %v2666_v44 }
 0x19d   : > { %v2091_v0 = vpop.eup %2090  ;;  %v920_v2 = vmul.f32 0.5, %v907_v53  ;;  %v596_v58 = vadd.f32 %v583_v55, %v443_v54 }
 0x19e   : > { %v945_v50 = vadd.f32 1.0, %v2091_v0  ;;  %v859_v63 = vpop.f32.mrf.mxu0 }
 0x19f   : > { %2092 = vtanh.f32 %v920_v2  ;;  %v745_v21 = vadd.f32 %v732_v60, %v596_v58  ;;  %v2219_v2 = vmov 1.0  }
 0x1a0   : > { %v958_v36 = vmul.f32 0.5, %v945_v50  ;;  %2019 = vmatpush.msk.msra.mxu1 %vm1588_vm15, %v2219_v2 }
 0x1a1   : > { %v894_v6 = vadd.f32 %v881_v5, %v745_v21 }
 0x1a2   : > { %v561_v7 = vpop.f32.mrf.mxu2  ;;  %v2678_v4 = vmul.f32 %v958_v36, %v906_v17  ;;  %v882_v17 = vmul.f32 %v2582_v22, %v859_v63  ;;  %2020 = vmatpush.msk.msra.mxu1 %vm1587_vm0, %v2219_v2 }
 0x1a3   : > { %v908_v41 = vadd.f32 %v2592_v37, %v894_v6  ;;  %v584_v9 = vmul.f32 %v2572_v52, %v561_v7  ;;  %v710_v11 = vpop.f32.mrf.mxu3 }
 0x1a4   : > { %v733_v16 = vmul.f32 %v2577_v20, %v710_v11  ;;  %1965 = vmatmul.msk.f32.gmra.mxu1 %vm978_vm5, %v2678_v4  ;;  %1978 = vmatmul.msk.f32.gmra.mxu2 %vm978_vm5, %v2678_v4 }
 0x1a5   : > { %v2093_v19 = vpop.eup %2092  ;;  %v921_v24 = vmul.f32 0.5, %v908_v41  ;;  %v597_v28 = vadd.f32 %v584_v9, %v2309_v23  ;;  %v1350_v23 = vand.u32 7, %v2495_v18  ;;  %2021 = vmatpush.msk.msra.mxu1 %vm1586_vm1, %v2219_v2  ;;  %v222_v18 = vld [vmem:[%s3088_s3 + $0x19] sm:$0x1] }
 0x1a6   : > { %v946_v29 = vadd.f32 1.0, %v2093_v19  ;;  %v862_v26 = vpop.f32.mrf.mxu0 }
 0x1a7   : > { %2094 = vtanh.f32 %v921_v24  ;;  %v746_v32 = vadd.f32 %v733_v16, %v597_v28  ;;  %v883_v59 = vmul.f32 %v2582_v22, %v862_v26  ;;  %vm1358_vm12 = vcmp.eq.s32.totalorder %v1350_v23, %v2369_v43  ;;  %2022 = vmatpush.msk.msra.mxu1 %vm1585_vm2, %v2219_v2 }
 0x1a8   : > { %v959_v33 = vmul.f32 0.5, %v946_v29  ;;  %1985 = vmatpush.msk.msra.mxu3 %vm1358_vm12, %v2219_v2  ;;  %v1348_v26 = vand.u32 7, %v2473_v8 }
 0x1a9   : > { %v895_v34 = vadd.f32 %v882_v17, %v746_v32  ;;  %v1349_v17 = vand.u32 7, %v2484_v13  ;;  %2023 = vmatpush.msk.msra.mxu1 %vm1584_vm4, %v2219_v2 }
 0x1aa   : > { %v564_v38 = vpop.f32.mrf.mxu2  ;;  %v2689_v48 = vmul.f32 %v959_v33, %v907_v53  ;;  %vm1356_vm14 = vcmp.eq.s32.totalorder %v1348_v26, %v2369_v43  ;;  %v1248_v26 = vmul.f32 1.442695, %v222_v18 }
 0x1ab   : > { %v909_v40 = vadd.f32 %v2592_v37, %v895_v34  ;;  %v585_v39 = vmul.f32 %v2572_v52, %v564_v38  ;;  %v713_v51 = vpop.f32.mrf.mxu3  ;;  %vm1357_vm13 = vcmp.eq.s32.totalorder %v1349_v17, %v2369_v43  ;;  %v1347_v17 = vand.u32 7, %v2458_v3  ;;  %2024 = vmatpush.msk.msra.mxu1 %vm1583_vm7, %v2219_v2 }
 0x1ac   : > { %v734_v46 = vmul.f32 %v2577_v20, %v713_v51  ;;  %1966 = vmatmul.msk.f32.gmra.mxu1 %vm978_vm5, %v2689_v48  ;;  %1979 = vmatmul.msk.f32.gmra.mxu2 %vm978_vm5, %v2689_v48 }
 0x1ad   : > { %v2095_v54 = vpop.eup %2094  ;;  %v922_v55 = vmul.f32 0.5, %v909_v40  ;;  %v598_v53 = vadd.f32 %v585_v39, %v2318_v27  ;;  %1986 = vmatpush.msk.msra.mxu3 %vm1357_vm13, %v2219_v2  ;;  %vm1355_vm3 = vcmp.eq.s32.totalorder %v1347_v17, %v2369_v43  ;;  %2025 = vmatpush.msk.msra.mxu1 %vm1582_vm9, %v2219_v2  ;;  %vm1407_vm13 = vcmask 523264  }
 0x1ae   : > { %v947_v60 = vadd.f32 1.0, %v2095_v54  ;;  %v865_v21 = vpop.f32.mrf.mxu0  ;;  %v2730_v54 = vpop.f32.mrf.mxu1 }
 0x1af   : > { %2096 = vtanh.f32 %v922_v55  ;;  %v747_v0 = vadd.f32 %v734_v46, %v598_v53  ;;  %1987 = vmatpush.msk.msra.mxu3 %vm1356_vm14, %v2219_v2  ;;  %2026 = vmatpush.msk.msra.mxu1 %vm1581_vm11, %v2219_v2 }
 0x1b0   : > { %v960_v58 = vmul.f32 0.5, %v947_v60 }
 0x1b1   : > { %v896_v5 = vadd.f32 %v883_v59, %v747_v0  ;;  %1988 = vmatpush.msk.msra.mxu3 %vm1355_vm3, %v2219_v2 }
 0x1b2   : > { %v567_v50 = vpop.f32.mrf.mxu2  ;;  %v2703_v63 = vmul.f32 %v960_v58, %v908_v41  ;;  %v884_v41 = vmul.f32 %v2582_v22, %v865_v21 }
 0x1b3   : > { %v910_v36 = vadd.f32 %v2592_v37, %v896_v5  ;;  %v586_v27 = vmul.f32 %v2572_v52, %v567_v50  ;;  %v716_v6 = vpop.f32.mrf.mxu3 }
 0x1b4   : > { %v735_v7 = vmul.f32 %v2577_v20, %v716_v6  ;;  %1967 = vmatmul.msk.f32.gmra.mxu1 %vm978_vm5, %v2703_v63  ;;  %1980 = vmatmul.msk.f32.gmra.mxu2 %vm978_vm5, %v2703_v63 }
 0x1b5   : > { %v2097_v9 = vpop.eup %2096  ;;  %v923_v11 = vmul.f32 0.5, %v910_v36  ;;  %v599_v16 = vadd.f32 %v586_v27, %v2327_v31 }
 0x1b6   : > { %v948_v19 = vadd.f32 1.0, %v2097_v9 }
 0x1b7   : > { %2098 = vtanh.f32 %v923_v11  ;;  %v748_v24 = vadd.f32 %v735_v7, %v599_v16 }
 0x1b8   : > { %v961_v28 = vmul.f32 0.5, %v948_v19 }
 0x1b9   : > { %v897_v29 = vadd.f32 %v884_v41, %v748_v24  ;;  %v2765_v41 = vld [vmem:[%s3088_s3 + $0x18] ss:$0 sm:$0xff] }
 0x1ba   : > { %v570_v32 = vpop.f32.mrf.mxu2  ;;  %v2715_v33 = vmul.f32 %v961_v28, %v909_v40 }
 0x1bb   : > { %v911_v34 = vadd.f32 %v2592_v37, %v897_v29  ;;  %v587_v31 = vmul.f32 %v2572_v52, %v570_v32  ;;  %v719_v38 = vpop.f32.mrf.mxu3  ;;  %v1346_v29 = vand.u32 7, %v2443_v62  ;;  %v1344_v62 = vand.u32 7, %v2398_v49 }
 0x1bc   : > { %1968 = vmatmul.msk.f32.gmra.mxu1 %vm978_vm5, %v2715_v33  ;;  %1981 = vmatmul.msk.f32.gmra.mxu2 %vm978_vm5, %v2715_v33  ;;  %v736_v52 = vmul.f32 %v2577_v20, %v719_v38 }
 0x1bd   : > { %v2099_v40 = vpop.eup %2098  ;;  %v924_v39 = vmul.f32 0.5, %v911_v34  ;;  %v600_v46 = vadd.f32 %v587_v31, %v2339_v35  ;;  %vm1354_vm6 = vcmp.eq.s32.totalorder %v1346_v29, %v2369_v43  ;;  %vm1352_vm10 = vcmp.eq.s32.totalorder %v1344_v62, %v2369_v43 }
 0x1be   : > { %v949_v51 = vadd.f32 1.0, %v2099_v40  ;;  %1989 = vmatpush.msk.msra.mxu3 %vm1354_vm6, %v2219_v2 }
 0x1bf   : > { %2100 = vtanh.f32 %v924_v39  ;;  %v749_v59 = vadd.f32 %v736_v52, %v600_v46 }
 0x1c0   : > { %v962_v23 = vmul.f32 0.5, %v949_v51 }
 0x1c2   : > { %v868_v55 = vpop.f32.mrf.mxu2  ;;  %v2732_v53 = vmul.f32 %v962_v23, %v910_v36  ;;  %v2742_v36 = vpop.f32.mrf.mxu1 }
 0x1c3   : > { %v885_v60 = vmul.f32 %v2582_v22, %v868_v55 }
 0x1c4   : > { %1969 = vmatmul.msk.f32.gmra.mxu1 %vm978_vm5, %v2732_v53  ;;  %1982 = vmatmul.msk.f32.gmra.mxu2 %vm978_vm5, %v2732_v53 }
 0x1c5   : > { %v2101_v0 = vpop.eup %2100  ;;  %v898_v58 = vadd.f32 %v885_v60, %v749_v59 }
 0x1c6   : > { %v950_v35 = vadd.f32 1.0, %v2101_v0 }
 0x1c7   : > { %v912_v20 = vadd.f32 %v2592_v37, %v898_v58 }
 0x1c8   : > { %v963_v5 = vmul.f32 0.5, %v950_v35 }
 0x1c9   : > { %v925_v50 = vmul.f32 0.5, %v912_v20 }
 0x1ca   : > { %v2740_v21 = vmul.f32 %v963_v5, %v911_v34  ;;  %v2748_v7 = vpop.f32.mrf.mxu1  ;;  %v1345_v34 = vand.u32 7, %v2428_v57  ;;  %v1343_v57 = vand.u32 7, %v2367_v42 }
 0x1cb   : > { %2102 = vtanh.f32 %v925_v50 }
 0x1cc   : > { %1970 = vmatmul.msk.f32.gmra.mxu1 %vm978_vm5, %v2740_v21  ;;  %1983 = vmatmul.msk.f32.gmra.mxu2 %vm978_vm5, %v2740_v21  ;;  %vm1353_vm8 = vcmp.eq.s32.totalorder %v1345_v34, %v2369_v43  ;;  %vm1351_vm12 = vcmp.eq.s32.totalorder %v1343_v57, %v2369_v43 }
 0x1cd   : > { %1990 = vmatpush.msk.msra.mxu3 %vm1353_vm8, %v2219_v2 }
 0x1cf   : > { %1991 = vmatpush.msk.msra.mxu3 %vm1352_vm10, %v2219_v2 }
 0x1d1   : > { %v2103_v22 = vpop.eup %2102  ;;  %1992 = vmatpush.msk.msra.mxu3 %vm1351_vm12, %v2219_v2 }
 0x1d2   : > { %v951_v27 = vadd.f32 1.0, %v2103_v22  ;;  %v2756_v37 = vpop.f32.mrf.mxu1 }
 0x1d4   : > { %v964_v6 = vmul.f32 0.5, %v951_v27 }
 0x1d6   : > { %v2750_v9 = vmul.f32 %v964_v6, %v912_v20 }
 0x1d8   : > { %1971 = vmatmul.msk.f32.gmra.mxu1 %vm978_vm5, %v2750_v9  ;;  %1984 = vmatmul.msk.f32.gmra.mxu2 %vm978_vm5, %v2750_v9 }
 0x1da   : > { %v2758_v11 = vpop.f32.mrf.mxu1 }
 0x1e2   : > { %v2760_v16 = vpop.f32.mrf.mxu1 }
 0x1ea   : > { %v2792_v8 = vpop.f32.mrf.mxu1 }
 0x1f2   : > { %v1035_v23 = vpop.f32.mrf.mxu1 }
 0x1f7   : > { %v1092_v19 = vpop.f32.mrf.mxu2 }
 0x1f8   : > { %v2773_v24 = vadd.f32 %v2765_v41, %v1092_v19 }
 0x1fa   : > { %v1144_v28 = vand.u32 2147483647, %v2773_v24  ;;  %v1131_v2 = vmax.f32 %v2773_v24, 0.0  ;;  %v1038_v6 = vpop.f32.mrf.mxu1 }
 0x1fc   : > { %v1157_v13 = vsub.f32 0.0, %v1144_v28 }
 0x1fe   : > { %v1170_v32 = vmul.f32 1.442695, %v1157_v13 }
 0x1ff   : > { %v1095_v3 = vpop.f32.mrf.mxu2 }
 0x200   : > { %2104 = vpow2.f32 %v1170_v32  ;;  %v1096_v31 = vadd.f32 %v2765_v41, %v1095_v3 }
 0x201   : > { %2106 = vpow2.f32 %v1248_v26 }
 0x202   : > { %v1145_v38 = vand.u32 2147483647, %v1096_v31  ;;  %v1132_v3 = vmax.f32 %v1096_v31, 0.0 }
 0x204   : > { %v1158_v40 = vsub.f32 0.0, %v1145_v38 }
 0x206   : > { %v2105_v49 = vpop.eup %2104  ;;  %v1172_v39 = vmul.f32 1.442695, %v1158_v40  ;;  %v1291_v40 = vld [vmem:[%s2832_s23] sm:$0xff] }
 0x207   : > { %v1196_v51 = vadd.f32 1.0, %v2105_v49  ;;  %v1098_v46 = vpop.f32.mrf.mxu2  ;;  %v2107_v52 = vpop.eup %2106 }
 0x208   : > { %2108 = vpow2.f32 %v1172_v39  ;;  %v1099_v55 = vadd.f32 %v2765_v41, %v1098_v46  ;;  %v1250_v59 = vsub.f32 0.0, %v2107_v52  ;;  %v1041_v39 = vpop.f32.mrf.mxu1 }
 0x209   : > { %2110 = vlog2.f32 %v1196_v51 }
 0x20a   : > { %v1146_v42 = vand.u32 2147483647, %v1099_v55  ;;  %v2817_v20 = vperm.slane %v1250_v59, 0 }
 0x20c   : > { %v1159_v60 = vsub.f32 0.0, %v1146_v42 }
 0x20e   : > { %v2109_v0 = vpop.eup %2108  ;;  %v1174_v58 = vmul.f32 1.442695, %v1159_v60 }
 0x20f   : > { %v2111_v35 = vpop.eup %2110  ;;  %v1197_v43 = vadd.f32 1.0, %v2109_v0  ;;  %v1101_v5 = vpop.f32.mrf.mxu2 }
 0x210   : > { %v1210_v50 = vmul.f32 0.6931472, %v2111_v35  ;;  %2112 = vpow2.f32 %v1174_v58  ;;  %v2821_v22 = vadd.f32 %v2765_v41, %v1101_v5  ;;  %v1367_v35 = vld [vmem:[%s3087_s2] sm:$0xff] }
 0x211   : > { %2114 = vlog2.f32 %v1197_v43  ;;  %v1133_v43 = vmax.f32 %v1099_v55, 0.0 }
 0x212   : > { %v1235_v27 = vadd.f32 %v1210_v50, %v1131_v2  ;;  %v1147_v19 = vand.u32 2147483647, %v2821_v22 }
 0x214   : > { %v1252_v28 = vmul.f32 %v2817_v20, %v1235_v27  ;;  %v1160_v17 = vsub.f32 0.0, %v1147_v19  ;;  %v1317_v60 = vmul.f32 %v1235_v27, %v1035_v23 }
 0x216   : > { %v2113_v18 = vpop.eup %2112  ;;  %v1265_v13 = vmul.f32 1.442695, %v1252_v28  ;;  %v1176_v29 = vmul.f32 1.442695, %v1160_v17 }
 0x217   : > { %v2115_v32 = vpop.eup %2114  ;;  %v1198_v26 = vadd.f32 1.0, %v2113_v18  ;;  %v1104_v24 = vpop.f32.mrf.mxu2 }
 0x218   : > { %2116 = vpow2.f32 %v1265_v13  ;;  %v1212_v34 = vmul.f32 0.6931472, %v2115_v32  ;;  %v2826_v62 = vadd.f32 %v2765_v41, %v1104_v24  ;;  %v1292_v13 = vld [vmem:[%s2832_s23 + $0x8] sm:$0xff]  ;;  %v1044_v32 = vpop.f32.mrf.mxu1 }
 0x219   : > { %2118 = vlog2.f32 %v1198_v26 }
 0x21a   : > { %v1236_v38 = vadd.f32 %v1212_v34, %v1132_v3  ;;  %2120 = vpow2.f32 %v1176_v29  ;;  %v1148_v57 = vand.u32 2147483647, %v2826_v62 }
 0x21c   : > { %v1253_v49 = vmul.f32 %v2817_v20, %v1236_v38  ;;  %v1161_v31 = vsub.f32 0.0, %v1148_v57  ;;  %v1318_v57 = vmul.f32 %v1236_v38, %v1038_v6 }
 0x21e   : > { %v2117_v51 = vpop.eup %2116  ;;  %v1267_v46 = vmul.f32 1.442695, %v1253_v49  ;;  %v1178_v52 = vmul.f32 1.442695, %v1161_v31  ;;  %v1368_v31 = vld [vmem:[%s3087_s2 + $0x8] sm:$0xff] }
 0x21f   : > { %v2119_v42 = vpop.eup %2118  ;;  %v1304_v59 = vmul.f32 %v2117_v51, %v1291_v40  ;;  %v1107_v0 = vpop.f32.mrf.mxu2 }
 0x220   : > { %v2121_v58 = vpop.eup %2120  ;;  %2122 = vpow2.f32 %v1267_v46  ;;  %v1214_v5 = vmul.f32 0.6931472, %v2119_v42  ;;  %v2841_v2 = vadd.f32 %v2765_v41, %v1107_v0  ;;  %v1293_v0 = vld [vmem:[%s2832_s23 + $0x10] sm:$0xff] }
 0x221   : > { %v1330_v50 = vadd.f32 %v1317_v60, %v1304_v59  ;;  %v1199_v19 = vadd.f32 1.0, %v2121_v58  ;;  %2124 = vpow2.f32 %v1178_v52  ;;  %v1134_v52 = vmax.f32 %v2821_v22, 0.0 }
 0x222   : > { %v1237_v28 = vadd.f32 %v1214_v5, %v1133_v43  ;;  %v1149_v23 = vand.u32 2147483647, %v2841_v2 }
 0x223   : > { %v1380_v27 = vmul.f32 %v1367_v35, %v1330_v50  ;;  %2126 = vlog2.f32 %v1199_v19  ;;  %2027 = vmatmul.msk.f32.vlgmr.msra.gmra.mxu1 %vm1407_vm13, %v1330_v50 }
 0x224   : > { %v1254_v17 = vmul.f32 %v2817_v20, %v1237_v28  ;;  %v1162_v18 = vsub.f32 0.0, %v1149_v23  ;;  %v1319_v22 = vmul.f32 %v1237_v28, %v1041_v39 }
 0x225   : > { %1993 = vmatmul.msk.f32.vlgmr.msra.gmra.mxu3 %vm1407_vm13, %v1380_v27 }
 0x226   : > { %v2123_v55 = vpop.eup %2122  ;;  %v1269_v29 = vmul.f32 1.442695, %v1254_v17  ;;  %v1180_v26 = vmul.f32 1.442695, %v1162_v18  ;;  %v1047_v17 = vpop.f32.mrf.mxu1 }
 0x227   : > { %v2125_v24 = vpop.eup %2124  ;;  %v1110_v3 = vpop.f32.mrf.mxu2  ;;  %v1305_v34 = vmul.f32 %v2123_v55, %v1292_v13  ;;  %v1369_v55 = vld [vmem:[%s3087_s2 + $0x10] sm:$0xff] }
 0x228   : > { %2128 = vpow2.f32 %v1269_v29  ;;  %v1200_v40 = vadd.f32 1.0, %v2125_v24  ;;  %v2849_v49 = vadd.f32 %v2765_v41, %v1110_v3  ;;  %v1135_v29 = vmax.f32 %v2826_v62, 0.0 }
 0x229   : > { %v2127_v51 = vpop.eup %2126  ;;  %2130 = vpow2.f32 %v1180_v26  ;;  %v1331_v46 = vadd.f32 %v1318_v57, %v1305_v34 }
 0x22a   : > { %v1216_v42 = vmul.f32 0.6931472, %v2127_v51  ;;  %2132 = vlog2.f32 %v1200_v40  ;;  %v1150_v59 = vand.u32 2147483647, %v2849_v49  ;;  %v1294_v51 = vld [vmem:[%s2832_s23 + $0x18] sm:$0xff] }
 0x22b   : > { %2028 = vmatmul.msk.f32.gmra.mxu1 %vm1407_vm13, %v1331_v46  ;;  %v1381_v6 = vmul.f32 %v1368_v31, %v1331_v46 }
 0x22c   : > { %v1238_v38 = vadd.f32 %v1216_v42, %v1134_v52  ;;  %v1163_v60 = vsub.f32 0.0, %v1150_v59 }
 0x22d   : > { %1994 = vmatmul.msk.f32.gmra.mxu3 %vm1407_vm13, %v1381_v6 }
 0x22e   : > { %v2129_v58 = vpop.eup %2128  ;;  %v1255_v35 = vmul.f32 %v2817_v20, %v1238_v38  ;;  %v1182_v43 = vmul.f32 1.442695, %v1163_v60 }
 0x22f   : > { %v2131_v5 = vpop.eup %2130  ;;  %v1113_v50 = vpop.f32.mrf.mxu2  ;;  %v1306_v19 = vmul.f32 %v2129_v58, %v1293_v0  ;;  %v1320_v0 = vmul.f32 %v1238_v38, %v1044_v32 }
 0x230   : > { %v2133_v23 = vpop.eup %2132  ;;  %v1271_v27 = vmul.f32 1.442695, %v1255_v35  ;;  %v1201_v18 = vadd.f32 1.0, %v2131_v5  ;;  %2134 = vpow2.f32 %v1182_v43  ;;  %v2861_v13 = vadd.f32 %v2765_v41, %v1113_v50  ;;  %v1050_v58 = vpop.f32.mrf.mxu1  ;;  %v1370_v50 = vld [vmem:[%s3087_s2 + $0x18] sm:$0xff] }
 0x231   : > { %v1218_v26 = vmul.f32 0.6931472, %v2133_v23  ;;  %v1332_v24 = vadd.f32 %v1319_v22, %v1306_v19  ;;  %v1136_v35 = vmax.f32 %v2841_v2, 0.0 }
 0x232   : > { %2136 = vpow2.f32 %v1271_v27  ;;  %v1151_v39 = vand.u32 2147483647, %v2861_v13 }
 0x233   : > { %v1239_v28 = vadd.f32 %v1218_v26, %v1135_v29  ;;  %2138 = vlog2.f32 %v1201_v18  ;;  %2029 = vmatmul.msk.f32.gmra.mxu1 %vm1407_vm13, %v1332_v24  ;;  %v1382_v3 = vmul.f32 %v1369_v55, %v1332_v24  ;;  %v1295_v18 = vld [vmem:[%s2832_s23 + $0x20] sm:$0xff] }
 0x234   : > { %v1164_v34 = vsub.f32 0.0, %v1151_v39 }
 0x235   : > { %v1256_v57 = vmul.f32 %v2817_v20, %v1239_v28  ;;  %1995 = vmatmul.msk.f32.gmra.mxu3 %vm1407_vm13, %v1382_v3  ;;  %v1321_v29 = vmul.f32 %v1239_v28, %v1047_v17  ;;  %v1371_v17 = vld [vmem:[%s3087_s2 + $0x20] sm:$0xff] }
 0x236   : > { %v2135_v40 = vpop.eup %2134  ;;  %v1184_v31 = vmul.f32 1.442695, %v1164_v34 }
 0x237   : > { %v1273_v46 = vmul.f32 1.442695, %v1256_v57  ;;  %v1202_v62 = vadd.f32 1.0, %v2135_v40  ;;  %v1116_v52 = vpop.f32.mrf.mxu2  ;;  %v1137_v40 = vmax.f32 %v2849_v49, 0.0 }
 0x238   : > { %v2137_v42 = vpop.eup %2136  ;;  %2140 = vpow2.f32 %v1184_v31  ;;  %v2873_v59 = vadd.f32 %v2765_v41, %v1116_v52 }
 0x239   : > { %v2139_v6 = vpop.eup %2138  ;;  %2142 = vpow2.f32 %v1273_v46  ;;  %v1307_v60 = vmul.f32 %v2137_v42, %v1294_v51 }
 0x23a   : > { %v1220_v43 = vmul.f32 0.6931472, %v2139_v6  ;;  %2144 = vlog2.f32 %v1202_v62  ;;  %v1152_v5 = vand.u32 2147483647, %v2873_v59  ;;  %v1053_v62 = vpop.f32.mrf.mxu1 }
 0x23b   : > { %v1333_v19 = vadd.f32 %v1320_v0, %v1307_v60  ;;  %v1296_v0 = vld [vmem:[%s2832_s23 + $0x28] sm:$0xff] }
 0x23c   : > { %v1240_v22 = vadd.f32 %v1220_v43, %v1136_v35  ;;  %v1165_v23 = vsub.f32 0.0, %v1152_v5 }
 0x23d   : > { %2030 = vmatmul.msk.f32.gmra.mxu1 %vm1407_vm13, %v1333_v19  ;;  %v1383_v27 = vmul.f32 %v1370_v50, %v1333_v19 }
 0x23e   : > { %v2141_v55 = vpop.eup %2140  ;;  %v1257_v32 = vmul.f32 %v2817_v20, %v1240_v22  ;;  %v1186_v38 = vmul.f32 1.442695, %v1165_v23  ;;  %v1138_v23 = vmax.f32 %v2861_v13, 0.0 }
 0x23f   : > { %v2143_v2 = vpop.eup %2142  ;;  %v1203_v26 = vadd.f32 1.0, %v2141_v55  ;;  %1996 = vmatmul.msk.f32.gmra.mxu3 %vm1407_vm13, %v1383_v27  ;;  %v1119_v24 = vpop.f32.mrf.mxu2  ;;  %v1322_v55 = vmul.f32 %v1240_v22, %v1050_v58 }
 0x240   : > { %v2145_v39 = vpop.eup %2144  ;;  %v1275_v3 = vmul.f32 1.442695, %v1257_v32  ;;  %2146 = vpow2.f32 %v1186_v38  ;;  %v2885_v34 = vadd.f32 %v2765_v41, %v1119_v24  ;;  %v1308_v57 = vmul.f32 %v2143_v2, %v1295_v18 }
 0x241   : > { %v1222_v31 = vmul.f32 0.6931472, %v2145_v39  ;;  %2148 = vlog2.f32 %v1203_v26 }
 0x242   : > { %2150 = vpow2.f32 %v1275_v3  ;;  %v1153_v28 = vand.u32 2147483647, %v2885_v34  ;;  %v1334_v51 = vadd.f32 %v1321_v29, %v1308_v57  ;;  %v1372_v29 = vld [vmem:[%s3087_s2 + $0x28] sm:$0xff]  ;;  %v1297_v3 = vld [vmem:[%s2832_s23 + $0x30] sm:$0xff]  ;;  %v1056_v58 = vpop.f32.mrf.mxu1 }
 0x243   : > { %v1241_v46 = vadd.f32 %v1222_v31, %v1137_v40 }
 0x244   : > { %v1166_v52 = vsub.f32 0.0, %v1153_v28  ;;  %v1384_v42 = vmul.f32 %v1371_v17, %v1334_v51 }
 0x245   : > { %v1258_v6 = vmul.f32 %v2817_v20, %v1241_v46  ;;  %2031 = vmatmul.msk.f32.gmra.mxu1 %vm1407_vm13, %v1334_v51 }
 0x246   : > { %v2147_v60 = vpop.eup %2146  ;;  %v1188_v49 = vmul.f32 1.442695, %v1166_v52  ;;  %v1323_v52 = vmul.f32 %v1241_v46, %v1053_v62  ;;  %v1298_v62 = vld [vmem:[%s2832_s23 + $0x38] sm:$0xff] }
 0x247   : > { %v2149_v35 = vpop.eup %2148  ;;  %v1277_v43 = vmul.f32 1.442695, %v1258_v6  ;;  %v1204_v5 = vadd.f32 1.0, %v2147_v60  ;;  %1997 = vmatmul.msk.f32.gmra.mxu3 %vm1407_vm13, %v1384_v42  ;;  %v1122_v50 = vpop.f32.mrf.mxu2  ;;  %v1139_v60 = vmax.f32 %v2873_v59, 0.0 }
 0x248   : > { %v2151_v19 = vpop.eup %2150  ;;  %v1224_v27 = vmul.f32 0.6931472, %v2149_v35  ;;  %2152 = vpow2.f32 %v1188_v49  ;;  %v2898_v18 = vadd.f32 %v2765_v41, %v1122_v50 }
 0x249   : > { %2154 = vpow2.f32 %v1277_v43  ;;  %v1309_v32 = vmul.f32 %v2151_v19, %v1296_v0  ;;  %v1373_v0 = vld [vmem:[%s3087_s2 + $0x30] sm:$0xff] }
 0x24a   : > { %v1242_v38 = vadd.f32 %v1224_v27, %v1138_v23  ;;  %2156 = vlog2.f32 %v1204_v5  ;;  %v1154_v2 = vand.u32 2147483647, %v2898_v18 }
 0x24b   : > { %v1335_v26 = vadd.f32 %v1322_v55, %v1309_v32 }
 0x24c   : > { %v1259_v13 = vmul.f32 %v2817_v20, %v1242_v38  ;;  %v1167_v24 = vsub.f32 0.0, %v1154_v2  ;;  %v1324_v55 = vmul.f32 %v1242_v38, %v1056_v58 }
 0x24d   : > { %2032 = vmatmul.msk.f32.gmra.mxu1 %vm1407_vm13, %v1335_v26  ;;  %v1385_v39 = vmul.f32 %v1372_v29, %v1335_v26  ;;  %v1059_v26 = vpop.f32.mrf.mxu1 }
 0x24e   : > { %v2153_v57 = vpop.eup %2152  ;;  %v1279_v22 = vmul.f32 1.442695, %v1259_v13  ;;  %v1190_v40 = vmul.f32 1.442695, %v1167_v24  ;;  %v1140_v13 = vmax.f32 %v2885_v34, 0.0  ;;  %v220_v34 = vld [vmem:[%s3088_s3 + $0x10] sm:$0xff] }
 0x24f   : > { %v2155_v31 = vpop.eup %2154  ;;  %v1205_v17 = vadd.f32 1.0, %v2153_v57  ;;  %1998 = vmatmul.msk.f32.gmra.mxu3 %vm1407_vm13, %v1385_v39  ;;  %v1125_v28 = vpop.f32.mrf.mxu2  ;;  %v1374_v39 = vld [vmem:[%s3087_s2 + $0x38] sm:$0xff]  ;;  %1651 = vmatpush.msra.mxu0 %v220_v34 }
 0x250   : > { %v2157_v51 = vpop.eup %2156  ;;  %2158 = vpow2.f32 %v1279_v22  ;;  %v2909_v42 = vadd.f32 %v2765_v41, %v1125_v28  ;;  %v1310_v6 = vmul.f32 %v2155_v31, %v1297_v3 }
 0x251   : > { %v1226_v49 = vmul.f32 0.6931472, %v2157_v51  ;;  %2160 = vlog2.f32 %v1205_v17  ;;  %v1299_v17 = vld [vmem:[%s2832_s23 + $0x40] sm:$0xff] }
 0x252   : > { %2162 = vpow2.f32 %v1190_v40  ;;  %v1155_v35 = vand.u32 2147483647, %v2909_v42  ;;  %v1336_v43 = vadd.f32 %v1323_v52, %v1310_v6 }
 0x253   : > { %v1243_v5 = vadd.f32 %v1226_v49, %v1139_v60 }
 0x254   : > { %v1168_v50 = vsub.f32 0.0, %v1155_v35  ;;  %v1386_v46 = vmul.f32 %v1373_v0, %v1336_v43 }
 0x255   : > { %v1260_v19 = vmul.f32 %v2817_v20, %v1243_v5  ;;  %2033 = vmatmul.msk.f32.gmra.mxu1 %vm1407_vm13, %v1336_v43  ;;  %v1325_v49 = vmul.f32 %v1243_v5, %v1059_v26  ;;  %v1375_v43 = vld [vmem:[%s3087_s2 + $0x40] sm:$0xff] }
 0x256   : > { %v2159_v23 = vpop.eup %2158  ;;  %v1192_v59 = vmul.f32 1.442695, %v1168_v50  ;;  %v1062_v50 = vpop.f32.mrf.mxu1 }
 0x257   : > { %v2161_v27 = vpop.eup %2160  ;;  %v1281_v32 = vmul.f32 1.442695, %v1260_v19  ;;  %1999 = vmatmul.msk.f32.gmra.mxu3 %vm1407_vm13, %v1386_v46  ;;  %v1311_v2 = vmul.f32 %v2159_v23, %v1298_v62  ;;  %v1141_v46 = vmax.f32 %v2898_v18, 0.0  ;;  %v1142_v18 = vmax.f32 %v2909_v42, 0.0  ;;  %v1301_v42 = vld [vmem:[%s2832_s23 + $0x50] sm:$0xff] }
 0x258   : > { %v2163_v29 = vpop.eup %2162  ;;  %v1228_v24 = vmul.f32 0.6931472, %v2161_v27  ;;  %2164 = vpow2.f32 %v1192_v59 }
 0x259   : > { %2166 = vpow2.f32 %v1281_v32  ;;  %v1206_v3 = vadd.f32 1.0, %v2163_v29  ;;  %v1337_v57 = vadd.f32 %v1324_v55, %v1311_v2  ;;  %v1300_v55 = vld [vmem:[%s2832_s23 + $0x48] sm:$0xff] }
 0x25a   : > { %v1244_v22 = vadd.f32 %v1228_v24, %v1140_v13 }
 0x25b   : > { %2168 = vlog2.f32 %v1206_v3  ;;  %v1128_v38 = vpop.f32.mrf.mxu2  ;;  %v1387_v58 = vmul.f32 %v1374_v39, %v1337_v57  ;;  %v1376_v39 = vld [vmem:[%s3087_s2 + $0x48] sm:$0xff] }
 0x25c   : > { %v1261_v40 = vmul.f32 %v2817_v20, %v1244_v22  ;;  %v2926_v31 = vadd.f32 %v2765_v41, %v1128_v38  ;;  %v1326_v29 = vmul.f32 %v1244_v22, %v1062_v50 }
 0x25d   : > { %2034 = vmatmul.msk.f32.gmra.mxu1 %vm1407_vm13, %v1337_v57 }
 0x25e   : > { %v2165_v28 = vpop.eup %2164  ;;  %v1283_v51 = vmul.f32 1.442695, %v1261_v40  ;;  %v1156_v52 = vand.u32 2147483647, %v2926_v31  ;;  %v1065_v34 = vpop.f32.mrf.mxu1 }
 0x25f   : > { %v2167_v6 = vpop.eup %2166  ;;  %v1207_v60 = vadd.f32 1.0, %v2165_v28  ;;  %2000 = vmatmul.msk.f32.gmra.mxu3 %vm1407_vm13, %v1387_v58 }
 0x260   : > { %2170 = vpow2.f32 %v1283_v51  ;;  %v1169_v41 = vsub.f32 0.0, %v1156_v52  ;;  %v1312_v0 = vmul.f32 %v2167_v6, %v1299_v17  ;;  %v1377_v6 = vld [vmem:[%s3087_s2 + $0x50] sm:$0xff] }
 0x261   : > { %v2169_v35 = vpop.eup %2168  ;;  %2172 = vlog2.f32 %v1207_v60 }
 0x262   : > { %v1230_v62 = vmul.f32 0.6931472, %v2169_v35  ;;  %v1194_v19 = vmul.f32 1.442695, %v1169_v41  ;;  %v1338_v23 = vadd.f32 %v1325_v49, %v1312_v0  ;;  %v1143_v41 = vmax.f32 %v2926_v31, 0.0  ;;  %v1302_v35 = vld [vmem:[%s2832_s23 + $0x58] sm:$0xff] }
 0x264   : > { %v1245_v59 = vadd.f32 %v1230_v62, %v1141_v46  ;;  %2174 = vpow2.f32 %v1194_v19  ;;  %v1388_v27 = vmul.f32 %v1375_v43, %v1338_v23 }
 0x265   : > { %2035 = vmatmul.msk.f32.gmra.mxu1 %vm1407_vm13, %v1338_v23 }
 0x266   : > { %v2171_v5 = vpop.eup %2170  ;;  %v1262_v32 = vmul.f32 %v2817_v20, %v1245_v59  ;;  %v1327_v51 = vmul.f32 %v1245_v59, %v1065_v34  ;;  %v1068_v46 = vpop.f32.mrf.mxu1 }
 0x267   : > { %v2173_v2 = vpop.eup %2172  ;;  %2001 = vmatmul.msk.f32.gmra.mxu3 %vm1407_vm13, %v1388_v27  ;;  %v1313_v26 = vmul.f32 %v2171_v5, %v1300_v55  ;;  %v1378_v27 = vld [vmem:[%s3087_s2 + $0x58] sm:$0xff] }
 0x268   : > { %v1285_v13 = vmul.f32 1.442695, %v1262_v32  ;;  %v1232_v24 = vmul.f32 0.6931472, %v2173_v2  ;;  %v1303_v32 = vld [vmem:[%s2832_s23 + $0x60] sm:$0xf] }
 0x269   : > { %v1339_v3 = vadd.f32 %v1326_v29, %v1313_v26 }
 0x26a   : > { %v2175_v57 = vpop.eup %2174  ;;  %2176 = vpow2.f32 %v1285_v13  ;;  %v1246_v38 = vadd.f32 %v1232_v24, %v1142_v18 }
 0x26b   : > { %v1208_v58 = vadd.f32 1.0, %v2175_v57  ;;  %v1389_v40 = vmul.f32 %v1376_v39, %v1339_v3  ;;  %v2973_v39 = vld [vmem:[%s3088_s3 + $0x1b] ss:$0 sm:$0xff] }
 0x26c   : > { %v1263_v22 = vmul.f32 %v2817_v20, %v1246_v38  ;;  %v1328_v19 = vmul.f32 %v1246_v38, %v1068_v46  ;;  %v369_v38 = vadd.f32 %v2973_v39, %v2742_v36  ;;  %v372_v34 = vadd.f32 %v2973_v39, %v2748_v7 }
 0x26d   : > { %2178 = vlog2.f32 %v1208_v58  ;;  %2036 = vmatmul.msk.f32.gmra.mxu1 %vm1407_vm13, %v1339_v3  ;;  %v366_v3 = vadd.f32 %v2973_v39, %v2730_v54  ;;  %v375_v7 = vadd.f32 %v2973_v39, %v2756_v37 }
 0x26e   : > { %v1287_v17 = vmul.f32 1.442695, %v1263_v22  ;;  %v1071_v29 = vpop.f32.mrf.mxu1  ;;  %v1504_v58 = vmul.f32 0.5, %v369_v38 }
 0x26f   : > { %2002 = vmatmul.msk.f32.gmra.mxu3 %vm1407_vm13, %v1389_v40  ;;  %v1503_v57 = vmul.f32 0.5, %v366_v3 }
 0x270   : > { %v2177_v28 = vpop.eup %2176  ;;  %2180 = vpow2.f32 %v1287_v17  ;;  %v2984_v17 = vld [vmem:[%s3088_s3 + $0x1d] ss:$0 sm:$0xff] }
 0x271   : > { %v1314_v52 = vmul.f32 %v2177_v28, %v1301_v42  ;;  %v1505_v42 = vmul.f32 0.5, %v372_v34 }
 0x273   : > { %v2179_v60 = vpop.eup %2178  ;;  %v1340_v49 = vadd.f32 %v1327_v51, %v1314_v52  ;;  %v1394_v51 = vmul.f32 %v2984_v17, %v2606_v30 }
 0x274   : > { %v1234_v0 = vmul.f32 0.6931472, %v2179_v60 }
 0x275   : > { %2037 = vmatmul.msk.f32.gmra.mxu1 %vm1407_vm13, %v1340_v49  ;;  %v1390_v43 = vmul.f32 %v1377_v6, %v1340_v49 }
 0x276   : > { %v2181_v50 = vpop.eup %2180  ;;  %v1247_v62 = vadd.f32 %v1234_v0, %v1143_v41 }
 0x277   : > { %2003 = vmatmul.msk.f32.gmra.mxu3 %vm1407_vm13, %v1390_v43  ;;  %v1315_v23 = vmul.f32 %v2181_v50, %v1302_v35  ;;  %v1506_v35 = vmul.f32 0.5, %v375_v7  ;;  %v1395_v43 = vmul.f32 %v2984_v17, %v2618_v61 }
 0x278   : > { %v1264_v59 = vmul.f32 %v2817_v20, %v1247_v62  ;;  %v1329_v26 = vmul.f32 %v1247_v62, %v1071_v29  ;;  %v1379_v20 = vld [vmem:[%s3087_s2 + $0x60] sm:$0xf] }
 0x279   : > { %v1341_v31 = vadd.f32 %v1328_v19, %v1315_v23  ;;  %v378_v19 = vadd.f32 %v2973_v39, %v2758_v11 }
 0x27a   : > { %v1289_v55 = vmul.f32 1.442695, %v1264_v59 }
 0x27b   : > { %v1391_v5 = vmul.f32 %v1378_v27, %v1341_v31  ;;  %v1507_v37 = vmul.f32 0.5, %v378_v19  ;;  %v1396_v27 = vmul.f32 %v2984_v17, %v2630_v25  ;;  %v384_v25 = vadd.f32 %v2973_v39, %v2792_v8 }
 0x27c   : > { %2182 = vpow2.f32 %v1289_v55 }
 0x27d   : > { %2038 = vmatmul.msk.f32.gmra.mxu1 %vm1407_vm13, %v1341_v31  ;;  %2184 = vtanh.f32 %v1503_v57 }
 0x27e   : > { %2186 = vtanh.f32 %v1504_v58 }
 0x27f   : > { %2004 = vmatmul.msk.f32.gmra.mxu3 %vm1407_vm13, %v1391_v5  ;;  %2188 = vtanh.f32 %v1505_v42 }
 0x280   : > { %2190 = vtanh.f32 %v1506_v35 }
 0x281   : > { %2192 = vtanh.f32 %v1507_v37 }
 0x282   : > { %v2183_v2 = vpop.eup %2182 }
 0x283   : > { %v1316_v13 = vmul.f32 %v2183_v2, %v1303_v32  ;;  %v2185_v40 = vpop.eup %2184  ;;  %v381_v32 = vadd.f32 %v2973_v39, %v2760_v16  ;;  %v1509_v16 = vmul.f32 0.5, %v384_v25 }
 0x284   : > { %v1529_v22 = vadd.f32 1.0, %v2185_v40  ;;  %v2187_v54 = vpop.eup %2186 }
 0x285   : > { %v1342_v18 = vadd.f32 %v1329_v26, %v1316_v13  ;;  %v1530_v6 = vadd.f32 1.0, %v2187_v54  ;;  %v2189_v0 = vpop.eup %2188  ;;  %v1508_v11 = vmul.f32 0.5, %v381_v32 }
 0x286   : > { %v1542_v28 = vmul.f32 0.5, %v1529_v22  ;;  %v1531_v30 = vadd.f32 1.0, %v2189_v0  ;;  %v2191_v31 = vpop.eup %2190 }
 0x287   : > { %2039 = vmatmul.msk.f32.gmra.mxu1 %vm1407_vm13, %v1342_v18  ;;  %v1392_v24 = vmul.f32 %v1379_v20, %v1342_v18  ;;  %v1543_v41 = vmul.f32 0.5, %v1530_v6  ;;  %v1532_v2 = vadd.f32 1.0, %v2191_v31  ;;  %v2193_v13 = vpop.eup %2192  ;;  %v1397_v20 = vmul.f32 %v2984_v17, %v2642_v47 }
 0x288   : > { %v1555_v52 = vmul.f32 %v1542_v28, %v366_v3  ;;  %v1544_v59 = vmul.f32 0.5, %v1531_v30  ;;  %2194 = vtanh.f32 %v1508_v11  ;;  %v1533_v3 = vadd.f32 1.0, %v2193_v13 }
 0x289   : > { %2005 = vmatmul.msk.f32.gmra.mxu3 %vm1407_vm13, %v1392_v24  ;;  %v1556_v46 = vmul.f32 %v1543_v41, %v369_v38  ;;  %v1545_v26 = vmul.f32 0.5, %v1532_v2  ;;  %v387_v47 = vadd.f32 %v2973_v39, %v2529_v56  ;;  %2196 = vtanh.f32 %v1509_v16 }
 0x28a   : > { %v1557_v5 = vmul.f32 %v1544_v59, %v372_v34  ;;  %v1546_v58 = vmul.f32 0.5, %v1533_v3  ;;  %v1398_v34 = vmul.f32 %v2984_v17, %v2654_v45  ;;  %v1399_v6 = vmul.f32 %v2984_v17, %v2666_v44 }
 0x28b   : > { %v1558_v24 = vmul.f32 %v1545_v26, %v375_v7  ;;  %v390_v45 = vadd.f32 %v2973_v39, %v2540_v1  ;;  %v393_v44 = vadd.f32 %v2973_v39, %v2551_v10  ;;  %v1402_v11 = vmul.f32 %v2984_v17, %v2703_v63 }
 0x28c   : > { %v1559_v42 = vmul.f32 %v1546_v58, %v378_v19 }
 0x28d   : > { %v1511_v0 = vmul.f32 0.5, %v390_v45 }
 0x28e   : > { %v2195_v40 = vpop.eup %2194 }
 0x28f   : > { %v1534_v8 = vadd.f32 1.0, %v2195_v40 }
 0x2a8   : > { %v1464_v36 = vpop.f32.mrf.mxu3 }
 0x2a9   : > { %v1465_v60 = vadd.f32 %v1464_v36, %v1394_v51  ;;  %v1510_v51 = vmul.f32 0.5, %v387_v47  ;;  %v1547_v36 = vmul.f32 0.5, %v1534_v8 }
 0x2ab   : > { %v1568_v49 = vmul.f32 %v1555_v52, %v1465_v60  ;;  %v2197_v52 = vpop.eup %2196  ;;  %2198 = vtanh.f32 %v1510_v51  ;;  %v1560_v56 = vmul.f32 %v1547_v36, %v381_v32 }
 0x2ac   : > { %v1535_v7 = vadd.f32 1.0, %v2197_v52  ;;  %2200 = vtanh.f32 %v1511_v0 }
 0x2ad   : > { %2006 = vmatmul.msk.f32.vlgmr.msra.gmra.mxu0 %vm978_vm5, %v1568_v49 }
 0x2ae   : > { %v1548_v35 = vmul.f32 0.5, %v1535_v7  ;;  %v1406_v7 = vmul.f32 %v2984_v17, %v2750_v9 }
 0x2b0   : > { %v1467_v50 = vpop.f32.mrf.mxu3  ;;  %v1561_v1 = vmul.f32 %v1548_v35, %v384_v25 }
 0x2b1   : > { %v1468_v62 = vadd.f32 %v1467_v50, %v1395_v43  ;;  %v2199_v43 = vpop.eup %2198  ;;  %v1400_v50 = vmul.f32 %v2984_v17, %v2678_v4  ;;  %v396_v4 = vadd.f32 %v2973_v39, %v2557_v12 }
 0x2b2   : > { %v1536_v30 = vadd.f32 1.0, %v2199_v43  ;;  %v2201_v37 = vpop.eup %2200 }
 0x2b3   : > { %v1569_v23 = vmul.f32 %v1556_v46, %v1468_v62  ;;  %v1537_v10 = vadd.f32 1.0, %v2201_v37  ;;  %v1513_v32 = vmul.f32 0.5, %v396_v4 }
 0x2b4   : > { %v1549_v59 = vmul.f32 0.5, %v1536_v30 }
 0x2b5   : > { %2007 = vmatmul.msk.f32.gmra.mxu0 %vm978_vm5, %v1569_v23  ;;  %v1512_v23 = vmul.f32 0.5, %v393_v44  ;;  %v1550_v2 = vmul.f32 0.5, %v1537_v10 }
 0x2b7   : > { %2202 = vtanh.f32 %v1512_v23  ;;  %v1563_v13 = vmul.f32 %v1550_v2, %v390_v45 }
 0x2b8   : > { %v1470_v55 = vpop.f32.mrf.mxu3  ;;  %2204 = vtanh.f32 %v1513_v32 }
 0x2b9   : > { %v1471_v61 = vadd.f32 %v1470_v55, %v1396_v27  ;;  %v1401_v27 = vmul.f32 %v2984_v17, %v2689_v48  ;;  %v1562_v55 = vmul.f32 %v1549_v59, %v387_v47  ;;  %v399_v48 = vadd.f32 %v2973_v39, %v2559_v14 }
 0x2ba   : > { %v402_v14 = vadd.f32 %v2973_v39, %v2561_v15  ;;  %v1405_v15 = vmul.f32 %v2984_v17, %v2740_v21  ;;  %v1748_v21 = vpop.f32.mrf.mxu1 }
 0x2bb   : > { %v1570_v29 = vmul.f32 %v1557_v5, %v1471_v61 }
 0x2bd   : > { %2008 = vmatmul.msk.f32.gmra.mxu0 %vm978_vm5, %v1570_v29  ;;  %v2203_v29 = vpop.eup %2202 }
 0x2be   : > { %v1538_v12 = vadd.f32 1.0, %v2203_v29  ;;  %v2205_v3 = vpop.eup %2204 }
 0x2bf   : > { %v1539_v16 = vadd.f32 1.0, %v2205_v3 }
 0x2c2   : > { %v1473_v18 = vpop.f32.mrf.mxu3  ;;  %v1751_v43 = vpop.f32.mrf.mxu1 }
 0x2c3   : > { %v1474_v57 = vadd.f32 %v1473_v18, %v1397_v20  ;;  %v1514_v18 = vmul.f32 0.5, %v399_v48 }
 0x2c5   : > { %v1571_v38 = vmul.f32 %v1558_v24, %v1474_v57  ;;  %v1551_v24 = vmul.f32 0.5, %v1538_v12  ;;  %v1403_v57 = vmul.f32 %v2984_v17, %v2715_v33  ;;  %2206 = vtanh.f32 %v1514_v18 }
 0x2c7   : > { %2009 = vmatmul.msk.f32.gmra.mxu0 %vm978_vm5, %v1571_v38  ;;  %v1564_v63 = vmul.f32 %v1551_v24, %v393_v44 }
 0x2ca   : > { %v1476_v22 = vpop.f32.mrf.mxu3  ;;  %v1754_v44 = vpop.f32.mrf.mxu1 }
 0x2cb   : > { %v1477_v28 = vadd.f32 %v1476_v22, %v1398_v34  ;;  %v1552_v34 = vmul.f32 0.5, %v1539_v16  ;;  %v2207_v47 = vpop.eup %2206  ;;  %v1515_v22 = vmul.f32 0.5, %v402_v14 }
 0x2cc   : > { %v1540_v33 = vadd.f32 1.0, %v2207_v47 }
 0x2cd   : > { %v1572_v54 = vmul.f32 %v1559_v42, %v1477_v28  ;;  %v1404_v42 = vmul.f32 %v2984_v17, %v2732_v53  ;;  %v1565_v28 = vmul.f32 %v1552_v34, %v396_v4  ;;  %2208 = vtanh.f32 %v1515_v22 }
 0x2ce   : > { %v1553_v36 = vmul.f32 0.5, %v1540_v33 }
 0x2cf   : > { %2010 = vmatmul.msk.f32.gmra.mxu0 %vm978_vm5, %v1572_v54 }
 0x2d2   : > { %v1479_v60 = vpop.f32.mrf.mxu3 }
 0x2d3   : > { %v1480_v49 = vadd.f32 %v1479_v60, %v1399_v6  ;;  %v2209_v39 = vpop.eup %2208  ;;  %v1566_v6 = vmul.f32 %v1553_v36, %v399_v48 }
 0x2d4   : > { %v1541_v60 = vadd.f32 1.0, %v2209_v39 }
 0x2d5   : > { %v1573_v41 = vmul.f32 %v1560_v56, %v1480_v49 }
 0x2d6   : > { %v1554_v53 = vmul.f32 0.5, %v1541_v60 }
 0x2d7   : > { %2011 = vmatmul.msk.f32.gmra.mxu0 %vm978_vm5, %v1573_v41 }
 0x2d8   : > { %v1567_v41 = vmul.f32 %v1554_v53, %v402_v14 }
 0x2da   : > { %v1482_v46 = vpop.f32.mrf.mxu3 }
 0x2db   : > { %v1483_v62 = vadd.f32 %v1482_v46, %v1400_v50  ;;  %v3048_v50 = vld [vmem:[%s3088_s3 + $0x1e] ss:$0 sm:$0xff] }
 0x2dd   : > { %v1574_v19 = vmul.f32 %v1561_v1, %v1483_v62  ;;  %v1757_v62 = vpop.f32.mrf.mxu1 }
 0x2df   : > { %2012 = vmatmul.msk.f32.gmra.mxu0 %vm978_vm5, %v1574_v19 }
 0x2e2   : > { %v1485_v31 = vpop.f32.mrf.mxu3 }
 0x2e3   : > { %v1486_v5 = vadd.f32 %v1485_v31, %v1401_v27 }
 0x2e5   : > { %v1575_v61 = vmul.f32 %v1562_v55, %v1486_v5  ;;  %v1760_v27 = vpop.f32.mrf.mxu1 }
 0x2e7   : > { %2013 = vmatmul.msk.f32.gmra.mxu0 %vm978_vm5, %v1575_v61 }
 0x2ea   : > { %v1488_v26 = vpop.f32.mrf.mxu3 }
 0x2eb   : > { %v1489_v20 = vadd.f32 %v1488_v26, %v1402_v11 }
 0x2ed   : > { %v1576_v25 = vmul.f32 %v1563_v13, %v1489_v20  ;;  %v1763_v10 = vpop.f32.mrf.mxu1 }
 0x2ef   : > { %2014 = vmatmul.msk.f32.gmra.mxu0 %vm978_vm5, %v1576_v25 }
 0x2f2   : > { %v1491_v38 = vpop.f32.mrf.mxu3 }
 0x2f3   : > { %v1492_v58 = vadd.f32 %v1491_v38, %v1403_v57 }
 0x2f5   : > { %v1577_v40 = vmul.f32 %v1564_v63, %v1492_v58  ;;  %v1766_v2 = vpop.f32.mrf.mxu1 }
 0x2f7   : > { %2015 = vmatmul.msk.f32.gmra.mxu0 %vm978_vm5, %v1577_v40 }
 0x2fa   : > { %v1494_v8 = vpop.f32.mrf.mxu3 }
 0x2fb   : > { %v1495_v54 = vadd.f32 %v1494_v8, %v1404_v42 }
 0x2fd   : > { %v1578_v51 = vmul.f32 %v1565_v28, %v1495_v54  ;;  %v1769_v26 = vpop.f32.mrf.mxu1 }
 0x2ff   : > { %2016 = vmatmul.msk.f32.gmra.mxu0 %vm978_vm5, %v1578_v51 }
 0x302   : > { %v1497_v52 = vpop.f32.mrf.mxu3 }
 0x303   : > { %v1498_v45 = vadd.f32 %v1497_v52, %v1405_v15 }
 0x305   : > { %v1579_v56 = vmul.f32 %v1566_v6, %v1498_v45  ;;  %v1772_v24 = vpop.f32.mrf.mxu1 }
 0x307   : > { %2017 = vmatmul.msk.f32.gmra.mxu0 %vm978_vm5, %v1579_v56 }
 0x30c   : > { %v1500_v49 = vpop.f32.mrf.mxu3 }
 0x30d   : > { %v1501_v0 = vadd.f32 %v1500_v49, %v1406_v7  ;;  %v1775_v16 = vpop.f32.mrf.mxu1 }
 0x30f   : > { %v1580_v35 = vmul.f32 %v1567_v41, %v1501_v0 }
 0x311   : > { %2018 = vmatmul.msk.f32.gmra.mxu0 %vm978_vm5, %v1580_v35 }
 0x315   : > { %v1778_v34 = vpop.f32.mrf.mxu1 }
 0x31d   : > { %v1781_v8 = vpop.f32.mrf.mxu1 }
 0x325   : > { %v1784_v51 = vpop.f32.mrf.mxu1 }
 0x32a   : > { %v1653_v46 = vpop.f32.mrf.mxu0 }
 0x32b   : > { %v1749_v30 = vadd.f32 %v1748_v21, %v1653_v46 }
 0x32d   : > { %v1788_v9 = vadd.f32 %v3048_v50, %v1749_v30 }
 0x32f   : > { %1801 = vst [vmem:[%s3054_s10] sm:$0xff] %v1788_v9 }
 0x332   : > { %v1656_v17 = vpop.f32.mrf.mxu0 }
 0x333   : > { %v1752_v1 = vadd.f32 %v1751_v43, %v1656_v17 }
 0x335   : > { %v1789_v19 = vadd.f32 %v3048_v50, %v1752_v1 }
 0x337   : > { %1802 = vst [vmem:[%s3054_s10 + $0x8] sm:$0xff] %v1789_v19 }
 0x33a   : > { %v1659_v23 = vpop.f32.mrf.mxu0 }
 0x33b   : > { %v1755_v59 = vadd.f32 %v1754_v44, %v1659_v23 }
 0x33d   : > { %v1790_v37 = vadd.f32 %v3048_v50, %v1755_v59 }
 0x33f   : > { %1803 = vst [vmem:[%s3054_s10 + $0x10] sm:$0xff] %v1790_v37 }
 0x344   : > { %v1662_v4 = vpop.f32.mrf.mxu0 }
 0x345   : > { %v1758_v31 = vadd.f32 %v1757_v62, %v1662_v4 }
 0x347   : > { %v1791_v55 = vadd.f32 %v3048_v50, %v1758_v31 }
 0x349   : > { %1804 = vst [vmem:[%s3054_s10 + $0x18] sm:$0xff] %v1791_v55 }
 0x34c   : > { %v1665_v5 = vpop.f32.mrf.mxu0 }
 0x34d   : > { %v1761_v61 = vadd.f32 %v1760_v27, %v1665_v5 }
 0x34f   : > { %v1792_v32 = vadd.f32 %v3048_v50, %v1761_v61 }
 0x351   : > { %1805 = vst [vmem:[%s3054_s10 + $0x20] sm:$0xff] %v1792_v32 }
 0x354   : > { %v1668_v29 = vpop.f32.mrf.mxu0 }
 0x355   : > { %v1764_v11 = vadd.f32 %v1763_v10, %v1668_v29 }
 0x357   : > { %v1793_v48 = vadd.f32 %v3048_v50, %v1764_v11 }
 0x359   : > { %1806 = vst [vmem:[%s3054_s10 + $0x28] sm:$0xff] %v1793_v48 }
 0x35c   : > { %v1671_v13 = vpop.f32.mrf.mxu0 }
 0x35d   : > { %v1767_v12 = vadd.f32 %v1766_v2, %v1671_v13 }
 0x35f   : > { %v1794_v20 = vadd.f32 %v3048_v50, %v1767_v12 }
 0x361   : > { %1807 = vst [vmem:[%s3054_s10 + $0x30] sm:$0xff] %v1794_v20 }
 0x364   : > { %v1674_v25 = vpop.f32.mrf.mxu0 }
 0x365   : > { %v1770_v18 = vadd.f32 %v1769_v26, %v1674_v25 }
 0x367   : > { %v1795_v3 = vadd.f32 %v3048_v50, %v1770_v18 }
 0x369   : > { %1808 = vst [vmem:[%s3054_s10 + $0x38] sm:$0xff] %v1795_v3 }
 0x36c   : > { %v1677_v57 = vpop.f32.mrf.mxu0 }
 0x36d   : > { %v1773_v38 = vadd.f32 %v1772_v24, %v1677_v57 }
 0x36f   : > { %v1796_v63 = vadd.f32 %v3048_v50, %v1773_v38 }
 0x371   : > { %1809 = vst [vmem:[%s3054_s10 + $0x40] sm:$0xff] %v1796_v63 }
 0x374   : > { %v1680_v58 = vpop.f32.mrf.mxu0 }
 0x375   : > { %v1776_v14 = vadd.f32 %v1775_v16, %v1680_v58 }
 0x377   : > { %v1797_v40 = vadd.f32 %v3048_v50, %v1776_v14 }
 0x379   : > { %1810 = vst [vmem:[%s3054_s10 + $0x48] sm:$0xff] %v1797_v40 }
 0x37c   : > { %v1683_v47 = vpop.f32.mrf.mxu0 }
 0x37d   : > { %v1779_v22 = vadd.f32 %v1778_v34, %v1683_v47 }
 0x37f   : > { %v1798_v42 = vadd.f32 %v3048_v50, %v1779_v22 }
 0x381   : > { %1811 = vst [vmem:[%s3054_s10 + $0x50] sm:$0xff] %v1798_v42 }
 0x384   : > { %v1686_v28 = vpop.f32.mrf.mxu0 }
 0x385   : > { %v1782_v33 = vadd.f32 %v1781_v8, %v1686_v28 }
 0x387   : > { %v1799_v54 = vadd.f32 %v3048_v50, %v1782_v33 }
 0x389   : > { %1812 = vst [vmem:[%s3054_s10 + $0x58] sm:$0xff] %v1799_v54 }
 0x38e   : > { %v1689_v36 = vpop.f32.mrf.mxu0 }
 0x38f   : > { %v1785_v15 = vadd.f32 %v1784_v51, %v1689_v36 }
 0x391   : > { %v1800_v39 = vadd.f32 %v3048_v50, %v1785_v15 }
 0x393   : > { %1813 = vst [vmem:[%s3054_s10 + $0x60] sm:$0xf] %v1800_v39 }
 0x394 PF: > { %s14_s15 = sadd.s32 1, %s2216_s15  }
 0x395   : > { %p11_p4 = scmp.ge.s32.totalorder %s14_s15, 4  }
 0x397   :  { %13 = sbr.rel (!%p11_p4) target bundleno = 1 (0x1), region = 69 }

</bundles_post_ra>
